<compile_context>
chip_gen: v7x
topology: tpu7x:2x2x1
jax: 0.10.0
libtpu: 0.0.40
codegen_flags: <defaults>
</compile_context>

<pallas_src>
import math

import jax
import jax.numpy as jnp
from jax.experimental import pallas as pl
from jax.experimental.pallas import tpu as pltpu

# ----------------------------- KAN configuration ----------------------------
GRID_SIZE = 5
SPLINE_ORDER = 3
GRID_RANGE = (-1.0, 1.0)
N_COEF = GRID_SIZE + SPLINE_ORDER              # 8 cubic B-spline bases per input feature
N_FEATS = N_COEF + 1                           # stacked feature blocks: [SiLU(x), bases_0..7]
N_INTERVALS = GRID_SIZE + 2 * SPLINE_ORDER     # 11 intervals of the extended uniform grid
H = (GRID_RANGE[1] - GRID_RANGE[0]) / GRID_SIZE          # 0.4 knot spacing
G0 = GRID_RANGE[0] - SPLINE_ORDER * H                    # -2.2 leftmost extended knot
BN_EPS = 1e-5
LANE = 128
SUBLANE = 8


def _knots():
    """Extended uniform knot vector (identical for every input feature)."""
    return [G0 + j * H for j in range(GRID_SIZE + 2 * SPLINE_ORDER + 1)]


def _round_up(n, m):
    return (n + m - 1) // m * m


# --------------------------------- kernel -----------------------------------
def _kan_features(x, compute_dtype):
    """x: (TB, F) f32 -> (TB, N_FEATS*F) stacked [SiLU(x), B_0(x) .. B_{N_COEF-1}(x)].

    Closed-form uniform-grid cubic B-spline evaluation: for x in interval i
    (i = floor((x-g0)/h), u = frac), basis j equals piece_{i-j}(u) for 0 <= i-j <= 3
    and 0 otherwise.  Out-of-range x (outside [-2.2, 2.2)) gets all-zero bases,
    matching the strict-upper-bound degree-0 test of the reference recursion.
    """
    # Interval assignment in f32 (exact floor -> exact small-integer index).
    t = (x - G0) * (1.0 / H)
    idx = jnp.floor(t)
    u = t - idx
    sixth = 1.0 / 6.0
    u2 = u * u
    u3 = u2 * u
    omu = 1.0 - u
    # Cardinal cubic B-spline pieces (piece m = value of basis j on interval j+m).
    p0 = u3 * sixth
    p1 = (u3 * -3.0 + u2 * 3.0 + u * 3.0 + 1.0) * sixth
    p2 = (u3 * 3.0 + u2 * -6.0 + 4.0) * sixth
    p3 = omu * omu * omu * sixth
    pieces = [p.astype(compute_dtype) for p in (p0, p1, p2, p3)]
    zero = jnp.zeros_like(pieces[0])

    # Interval one-hots, computed once and shared by all 8 bases.  idx values 0..10
    # are exactly representable in bf16, so casting keeps the comparisons exact while
    # letting the selects run in the packed compute dtype.
    idx_c = idx.astype(compute_dtype)
    eq = [idx_c == float(c) for c in range(N_INTERVALS)]

    bases = []
    for j in range(N_COEF):
        b = jnp.where(eq[j], pieces[0],
            jnp.where(eq[j + 1], pieces[1],
            jnp.where(eq[j + 2], pieces[2],
            jnp.where(eq[j + 3], pieces[3], zero))))
        bases.append(b)

    base_act = (x * jax.nn.sigmoid(x)).astype(compute_dtype)    # SiLU (EUP + 1 mul)
    return jnp.concatenate([base_act] + bases, axis=1)          # 128-lane-aligned blocks


def classifier3_kernel(x_ref, w1_ref, b1_ref, w2_ref, b2_ref, w3_ref, out_ref):
    # x_ref : (TB, in_pad) activation tile
    # wL_ref: (N_FEATS*inL_pad, outL_pad) pre-stacked [base ; spline] weights with the
    #         eval-mode BatchNorm scale already folded into the columns (VMEM-resident)
    # bL_ref: (1, outL_pad) folded BatchNorm shift
    # out   : (TB, out_pad)
    cdt = w1_ref.dtype
    h = x_ref[...].astype(jnp.float32)

    # layer 1: KANLinear + BatchNorm (eval, folded); Dropout is identity in eval mode
    f = _kan_features(h, cdt)
    h = jnp.dot(f, w1_ref[...], preferred_element_type=jnp.float32) + b1_ref[...]

    # layer 2: KANLinear + BatchNorm (eval, folded); Dropout identity
    f = _kan_features(h, cdt)
    h = jnp.dot(f, w2_ref[...], preferred_element_type=jnp.float32) + b2_ref[...]

    # layer 3: KANLinear only
    f = _kan_features(h, cdt)
    out_ref[...] = jnp.dot(f, w3_ref[...],
                           preferred_element_type=jnp.float32).astype(out_ref.dtype)


# ------------------------- one-time parameter packing -------------------------
def pack_kan_weights(base_w, spline_w, spline_scaler, in_pad, out_pad, dtype,
                     bn_scale=None):
    """base_w: (out,in)  spline_w: (out,in,N_COEF)  spline_scaler: (out,in)
    Returns a (N_FEATS*in_pad, out_pad) stacked, zero-padded, cast weight matrix whose
    row blocks match the in-kernel [SiLU(x), bases_0..7] feature concatenation; the
    optional eval-mode BatchNorm scale is folded into the columns."""
    out_f, in_f = base_w.shape
    scaled = spline_w * spline_scaler[..., None]                        # (out, in, coef)
    blocks = [jnp.transpose(base_w)] + \
             [jnp.transpose(scaled[:, :, c]) for c in range(N_COEF)]    # each (in, out)
    if bn_scale is not None:
        blocks = [b * bn_scale[None, :] for b in blocks]
    padded = [jnp.pad(b, ((0, in_pad - in_f), (0, out_pad - out_f))) for b in blocks]
    return jnp.concatenate(padded, axis=0).astype(dtype)


def fold_bn(gamma, beta, mean, var, out_pad):
    """Eval-mode BatchNorm1d folded to (scale to bake into weights, padded shift)."""
    scale = gamma / jnp.sqrt(var + BN_EPS)
    shift = beta - mean * scale
    shift = jnp.pad(shift, (0, out_pad - shift.shape[0])).reshape(1, out_pad)
    return scale, shift.astype(jnp.float32)


def prepare_classifier3(params, in_shape, hidden, out_shape, compute_dtype=jnp.bfloat16):
    """One-time weight stacking / BN folding / padding / casting."""
    in_pad = _round_up(in_shape, LANE)
    hid_pad = _round_up(hidden, LANE)
    out_pad = _round_up(out_shape, LANE)
    p1, p2, p3 = params["layer1"], params["layer2"], params["layer3"]
    s1, b1 = fold_bn(p1["bn_gamma"], p1["bn_beta"], p1["bn_mean"], p1["bn_var"], hid_pad)
    s2, b2 = fold_bn(p2["bn_gamma"], p2["bn_beta"], p2["bn_mean"], p2["bn_var"], hid_pad)
    w1 = pack_kan_weights(p1["base_w"], p1["spline_w"], p1["spline_scaler"],
                          in_pad, hid_pad, compute_dtype, bn_scale=s1)
    w2 = pack_kan_weights(p2["base_w"], p2["spline_w"], p2["spline_scaler"],
                          hid_pad, hid_pad, compute_dtype, bn_scale=s2)
    w3 = pack_kan_weights(p3["base_w"], p3["spline_w"], p3["spline_scaler"],
                          hid_pad, out_pad, compute_dtype)
    return {"w1": w1, "b1": b1, "w2": w2, "b2": b2, "w3": w3,
            "dims": (in_shape, in_pad, hid_pad, out_shape, out_pad)}


# --------------------------------- forward -----------------------------------
def classifier3_forward(prep, x, block_b=None):
    in_f, in_pad, hid_pad, out_f, out_pad = prep["dims"]
    B = x.shape[0]
    if block_b is None:
        # Evenly-sized 8-row-aligned tiles with a 256-row target: avoids near-empty
        # trailing tiles for awkward B, and B > 256 yields a >=2-step "parallel" grid
        # (shards across the two v7x TensorCores).
        n_tiles = max(1, -(-B // 256))
        block_b = _round_up(-(-B // n_tiles), SUBLANE)
    B_pad = _round_up(B, block_b)
    xp = jnp.pad(x.astype(jnp.float32), ((0, B_pad - B), (0, in_pad - in_f)))

    k1 = N_FEATS * in_pad
    k2 = N_FEATS * hid_pad

    def resident(shape):        # constant block index -> fetched once, stays in VMEM
        return pl.BlockSpec(shape, lambda i: (0, 0))

    wbytes = sum(int(prep[k].size) * prep[k].dtype.itemsize for k in ("w1", "w2", "w3"))
    cost = pl.CostEstimate(
        flops=int(2 * B_pad * (k1 * hid_pad + k2 * hid_pad + k2 * out_pad)),
        transcendentals=int(B_pad * (in_pad + 2 * hid_pad)),
        bytes_accessed=int(xp.size * 4 + B_pad * out_pad * 4 + wbytes))

    out = pl.pallas_call(
        classifier3_kernel,
        out_shape=jax.ShapeDtypeStruct((B_pad, out_pad), jnp.float32),
        grid=(B_pad // block_b,),
        in_specs=[
            pl.BlockSpec((block_b, in_pad), lambda i: (i, 0)),
            resident((k1, hid_pad)), resident((1, hid_pad)),
            resident((k2, hid_pad)), resident((1, hid_pad)),
            resident((k2, out_pad)),
        ],
        out_specs=pl.BlockSpec((block_b, out_pad), lambda i: (i, 0)),
        compiler_params=pltpu.CompilerParams(
            dimension_semantics=("parallel",),
            vmem_limit_bytes=32 * 1024 * 1024),
        cost_estimate=cost,
    )(xp, prep["w1"], prep["b1"], prep["w2"], prep["b2"], prep["w3"])
    return out[:B, :out_f]


# ----------------------------- parameter setup -------------------------------
def init_kan_params(key, in_f, out_f):
    k1, k2, k3 = jax.random.split(key, 3)
    bound = math.sqrt(6.0 / in_f)
    base_w = jax.random.uniform(k1, (out_f, in_f), jnp.float32, -bound, bound)
    spline_w = 0.1 * jax.random.uniform(k2, (out_f, in_f, N_COEF), jnp.float32, -1.0, 1.0)
    spline_scaler = 1.0 + 0.05 * jax.random.uniform(k3, (out_f, in_f), jnp.float32, -1.0, 1.0)
    return {"base_w": base_w, "spline_w": spline_w, "spline_scaler": spline_scaler}


def init_bn_params(key, n):
    # Randomized as-if-trained BatchNorm stats so the folded affine is exercised; the
    # eval-mode formula (x - mean)/sqrt(var+eps)*gamma + beta is identical either way.
    k1, k2, k3, k4 = jax.random.split(key, 4)
    return {
        "bn_gamma": 1.0 + 0.1 * jax.random.normal(k1, (n,), jnp.float32),
        "bn_beta": 0.05 * jax.random.normal(k2, (n,), jnp.float32),
        "bn_mean": 0.1 * jax.random.normal(k3, (n,), jnp.float32),
        "bn_var": 1.0 + 0.2 * jax.random.uniform(k4, (n,), jnp.float32, 0.0, 1.0),
    }


def init_classifier3_params(key, in_shape, hidden, out_shape):
    k1, k2, k3, kb1, kb2 = jax.random.split(key, 5)
    p1 = init_kan_params(k1, in_shape, hidden); p1.update(init_bn_params(kb1, hidden))
    p2 = init_kan_params(k2, hidden, hidden);   p2.update(init_bn_params(kb2, hidden))
    p3 = init_kan_params(k3, hidden, out_shape)
    return {"layer1": p1, "layer2": p2, "layer3": p3}


# ---------------------------- pure-JAX reference ------------------------------
def _kan_linear_ref(x, base_w, spline_w, spline_scaler):
    g = jnp.asarray(_knots(), jnp.float32)
    xe = x[:, :, None]
    bases = jnp.logical_and(xe >= g[:-1], xe < g[1:]).astype(jnp.float32)
    for k in range(1, SPLINE_ORDER + 1):
        bases = ((xe - g[: -(k + 1)]) / (g[k:-1] - g[: -(k + 1)]) * bases[:, :, :-1]
                 + (g[k + 1:] - xe) / (g[k + 1:] - g[1:-k]) * bases[:, :, 1:])
    base_out = jax.nn.silu(x) @ base_w.T
    scaled = (spline_w * spline_scaler[..., None]).reshape(base_w.shape[0], -1)
    spline_out = bases.reshape(x.shape[0], -1) @ scaled.T
    return base_out + spline_out


def _bn_ref(h, p):
    s = p["bn_gamma"] / jnp.sqrt(p["bn_var"] + BN_EPS)
    return (h - p["bn_mean"]) * s + p["bn_beta"]


def classifier3_ref(params, x):
    p1, p2, p3 = params["layer1"], params["layer2"], params["layer3"]
    h = _bn_ref(_kan_linear_ref(x, p1["base_w"], p1["spline_w"], p1["spline_scaler"]), p1)
    h = _bn_ref(_kan_linear_ref(h, p2["base_w"], p2["spline_w"], p2["spline_scaler"]), p2)
    return _kan_linear_ref(h, p3["base_w"], p3["spline_w"], p3["spline_scaler"])


# ----------------------------------- main -------------------------------------
if __name__ == "__main__":
    # TODO(synk): train-mode Dropout and KANLinear grid refit (update_grid) have no
    # inference equivalent; eval-mode semantics (dropout=identity, BN running stats
    # folded into the packed weights) are implemented.
    IN_SHAPE, HIDDEN, OUT_SHAPE, B = 64, 64, 9, 8

    key = jax.random.PRNGKey(0)
    kp, kx = jax.random.split(key)
    params = init_classifier3_params(kp, IN_SHAPE, HIDDEN, OUT_SHAPE)
    x = jax.random.uniform(kx, (B, IN_SHAPE), jnp.float32, -1.0, 1.0)

    ref = classifier3_ref(params, x)

    # f32 matmul operands: tight correctness check of the closed-form-spline fused path
    prep32 = prepare_classifier3(params, IN_SHAPE, HIDDEN, OUT_SHAPE,
                                 compute_dtype=jnp.float32)
    y32 = classifier3_forward(prep32, x)
    jax.block_until_ready(y32)
    assert y32.shape == (B, OUT_SHAPE)
    assert jnp.allclose(y32, ref, atol=1e-4, rtol=1e-4)

    # Multi-tile grid + padded trailing rows (grid of 3 steps with block_b=16)
    x2 = jax.random.uniform(jax.random.PRNGKey(1), (40, IN_SHAPE), jnp.float32, -1.0, 1.0)
    y2 = classifier3_forward(prep32, x2, block_b=16)
    jax.block_until_ready(y2)
    assert jnp.allclose(y2, classifier3_ref(params, x2), atol=1e-4, rtol=1e-4)

    # bf16 matmul operands / bf16 basis placement (f32 accumulation): production path
    prep16 = prepare_classifier3(params, IN_SHAPE, HIDDEN, OUT_SHAPE,
                                 compute_dtype=jnp.bfloat16)
    y16 = classifier3_forward(prep16, x)
    jax.block_until_ready(y16)
    assert y16.shape == (B, OUT_SHAPE)
    assert jnp.allclose(y16, ref, atol=5e-2, rtol=5e-2)

    print("KERNEL_OK")
</pallas_src>

<mosaic_0001>
module attributes {stable_mosaic.version = 11 : i64} {
  func.func @classifier3_kernel(%arg0: i32, %arg1: memref<8x128xf32, #tpu.memory_space<vmem>>, %arg2: memref<1152x128xf32, #tpu.memory_space<vmem>>, %arg3: memref<1x128xf32, #tpu.memory_space<vmem>>, %arg4: memref<1152x128xf32, #tpu.memory_space<vmem>>, %arg5: memref<1x128xf32, #tpu.memory_space<vmem>>, %arg6: memref<1152x128xf32, #tpu.memory_space<vmem>>, %arg7: memref<8x128xf32, #tpu.memory_space<vmem>>) attributes {dimension_semantics = [#tpu.dimension_semantics<parallel>], iteration_bounds = array<i64: 1>, scalar_prefetch = 0 : i64, scratch_operands = 0 : i64, tpu.core_type = #tpu.core_type<tc>, window_params = [{transform_indices = @transform_0, window_bounds = array<i64: 8, 128>}, {pipeline_mode = #tpu.pipeline_mode<synchronous>, transform_indices = @transform_1, window_bounds = array<i64: 1152, 128>}, {pipeline_mode = #tpu.pipeline_mode<synchronous>, transform_indices = @transform_2, window_bounds = array<i64: 1, 128>}, {pipeline_mode = #tpu.pipeline_mode<synchronous>, transform_indices = @transform_3, window_bounds = array<i64: 1152, 128>}, {pipeline_mode = #tpu.pipeline_mode<synchronous>, transform_indices = @transform_4, window_bounds = array<i64: 1, 128>}, {pipeline_mode = #tpu.pipeline_mode<synchronous>, transform_indices = @transform_5, window_bounds = array<i64: 1152, 128>}, {transform_indices = @transform_6, window_bounds = array<i64: 8, 128>}]} {
    %c0 = arith.constant 0 : index
    %c0_0 = arith.constant 0 : index
    %0 = vector.load %arg1[%c0, %c0_0] : memref<8x128xf32, #tpu.memory_space<vmem>>, vector<8x128xf32>
    %cst = arith.constant -2.200000e+00 : f32
    %1 = vector.broadcast %cst : f32 to vector<8x128xf32>
    %2 = arith.subf %0, %1 : vector<8x128xf32>
    %cst_1 = arith.constant 2.500000e+00 : f32
    %3 = vector.broadcast %cst_1 : f32 to vector<8x128xf32>
    %4 = arith.mulf %2, %3 : vector<8x128xf32>
    %5 = math.floor %4 : vector<8x128xf32>
    %6 = arith.subf %4, %5 : vector<8x128xf32>
    %7 = arith.mulf %6, %6 : vector<8x128xf32>
    %8 = arith.mulf %7, %6 : vector<8x128xf32>
    %cst_2 = arith.constant 1.000000e+00 : f32
    %9 = vector.broadcast %cst_2 : f32 to vector<8x128xf32>
    %10 = arith.subf %9, %6 : vector<8x128xf32>
    %cst_3 = arith.constant 0.166666672 : f32
    %11 = vector.broadcast %cst_3 : f32 to vector<8x128xf32>
    %12 = arith.mulf %8, %11 : vector<8x128xf32>
    %cst_4 = arith.constant -3.000000e+00 : f32
    %13 = vector.broadcast %cst_4 : f32 to vector<8x128xf32>
    %14 = arith.mulf %8, %13 : vector<8x128xf32>
    %cst_5 = arith.constant 3.000000e+00 : f32
    %15 = vector.broadcast %cst_5 : f32 to vector<8x128xf32>
    %16 = arith.mulf %7, %15 : vector<8x128xf32>
    %17 = arith.addf %14, %16 : vector<8x128xf32>
    %cst_6 = arith.constant 3.000000e+00 : f32
    %18 = vector.broadcast %cst_6 : f32 to vector<8x128xf32>
    %19 = arith.mulf %6, %18 : vector<8x128xf32>
    %20 = arith.addf %17, %19 : vector<8x128xf32>
    %cst_7 = arith.constant 1.000000e+00 : f32
    %21 = vector.broadcast %cst_7 : f32 to vector<8x128xf32>
    %22 = arith.addf %20, %21 : vector<8x128xf32>
    %cst_8 = arith.constant 0.166666672 : f32
    %23 = vector.broadcast %cst_8 : f32 to vector<8x128xf32>
    %24 = arith.mulf %22, %23 : vector<8x128xf32>
    %cst_9 = arith.constant 3.000000e+00 : f32
    %25 = vector.broadcast %cst_9 : f32 to vector<8x128xf32>
    %26 = arith.mulf %8, %25 : vector<8x128xf32>
    %cst_10 = arith.constant -6.000000e+00 : f32
    %27 = vector.broadcast %cst_10 : f32 to vector<8x128xf32>
    %28 = arith.mulf %7, %27 : vector<8x128xf32>
    %29 = arith.addf %26, %28 : vector<8x128xf32>
    %cst_11 = arith.constant 4.000000e+00 : f32
    %30 = vector.broadcast %cst_11 : f32 to vector<8x128xf32>
    %31 = arith.addf %29, %30 : vector<8x128xf32>
    %cst_12 = arith.constant 0.166666672 : f32
    %32 = vector.broadcast %cst_12 : f32 to vector<8x128xf32>
    %33 = arith.mulf %31, %32 : vector<8x128xf32>
    %34 = arith.mulf %10, %10 : vector<8x128xf32>
    %35 = arith.mulf %34, %10 : vector<8x128xf32>
    %cst_13 = arith.constant 0.166666672 : f32
    %36 = vector.broadcast %cst_13 : f32 to vector<8x128xf32>
    %37 = arith.mulf %35, %36 : vector<8x128xf32>
    %cst_14 = arith.constant 0.000000e+00 : f32
    %38 = vector.broadcast %cst_14 : f32 to vector<8x128xf32>
    %cst_15 = arith.constant 0.000000e+00 : f32
    %39 = vector.broadcast %cst_15 : f32 to vector<8x128xf32>
    %40 = arith.cmpf oeq, %5, %39 : vector<8x128xf32>
    %cst_16 = arith.constant 1.000000e+00 : f32
    %41 = vector.broadcast %cst_16 : f32 to vector<8x128xf32>
    %42 = arith.cmpf oeq, %5, %41 : vector<8x128xf32>
    %cst_17 = arith.constant 2.000000e+00 : f32
    %43 = vector.broadcast %cst_17 : f32 to vector<8x128xf32>
    %44 = arith.cmpf oeq, %5, %43 : vector<8x128xf32>
    %cst_18 = arith.constant 3.000000e+00 : f32
    %45 = vector.broadcast %cst_18 : f32 to vector<8x128xf32>
    %46 = arith.cmpf oeq, %5, %45 : vector<8x128xf32>
    %cst_19 = arith.constant 4.000000e+00 : f32
    %47 = vector.broadcast %cst_19 : f32 to vector<8x128xf32>
    %48 = arith.cmpf oeq, %5, %47 : vector<8x128xf32>
    %cst_20 = arith.constant 5.000000e+00 : f32
    %49 = vector.broadcast %cst_20 : f32 to vector<8x128xf32>
    %50 = arith.cmpf oeq, %5, %49 : vector<8x128xf32>
    %cst_21 = arith.constant 6.000000e+00 : f32
    %51 = vector.broadcast %cst_21 : f32 to vector<8x128xf32>
    %52 = arith.cmpf oeq, %5, %51 : vector<8x128xf32>
    %cst_22 = arith.constant 7.000000e+00 : f32
    %53 = vector.broadcast %cst_22 : f32 to vector<8x128xf32>
    %54 = arith.cmpf oeq, %5, %53 : vector<8x128xf32>
    %cst_23 = arith.constant 8.000000e+00 : f32
    %55 = vector.broadcast %cst_23 : f32 to vector<8x128xf32>
    %56 = arith.cmpf oeq, %5, %55 : vector<8x128xf32>
    %cst_24 = arith.constant 9.000000e+00 : f32
    %57 = vector.broadcast %cst_24 : f32 to vector<8x128xf32>
    %58 = arith.cmpf oeq, %5, %57 : vector<8x128xf32>
    %cst_25 = arith.constant 1.000000e+01 : f32
    %59 = vector.broadcast %cst_25 : f32 to vector<8x128xf32>
    %60 = arith.cmpf oeq, %5, %59 : vector<8x128xf32>
    %61 = arith.select %46, %37, %38 : vector<8x128xi1>, vector<8x128xf32>
    %62 = arith.select %44, %33, %61 : vector<8x128xi1>, vector<8x128xf32>
    %63 = arith.select %42, %24, %62 : vector<8x128xi1>, vector<8x128xf32>
    %64 = arith.select %40, %12, %63 : vector<8x128xi1>, vector<8x128xf32>
    %65 = arith.select %48, %37, %38 : vector<8x128xi1>, vector<8x128xf32>
    %66 = arith.select %46, %33, %65 : vector<8x128xi1>, vector<8x128xf32>
    %67 = arith.select %44, %24, %66 : vector<8x128xi1>, vector<8x128xf32>
    %68 = arith.select %42, %12, %67 : vector<8x128xi1>, vector<8x128xf32>
    %69 = arith.select %50, %37, %38 : vector<8x128xi1>, vector<8x128xf32>
    %70 = arith.select %48, %33, %69 : vector<8x128xi1>, vector<8x128xf32>
    %71 = arith.select %46, %24, %70 : vector<8x128xi1>, vector<8x128xf32>
    %72 = arith.select %44, %12, %71 : vector<8x128xi1>, vector<8x128xf32>
    %73 = arith.select %52, %37, %38 : vector<8x128xi1>, vector<8x128xf32>
    %74 = arith.select %50, %33, %73 : vector<8x128xi1>, vector<8x128xf32>
    %75 = arith.select %48, %24, %74 : vector<8x128xi1>, vector<8x128xf32>
    %76 = arith.select %46, %12, %75 : vector<8x128xi1>, vector<8x128xf32>
    %77 = arith.select %54, %37, %38 : vector<8x128xi1>, vector<8x128xf32>
    %78 = arith.select %52, %33, %77 : vector<8x128xi1>, vector<8x128xf32>
    %79 = arith.select %50, %24, %78 : vector<8x128xi1>, vector<8x128xf32>
    %80 = arith.select %48, %12, %79 : vector<8x128xi1>, vector<8x128xf32>
    %81 = arith.select %56, %37, %38 : vector<8x128xi1>, vector<8x128xf32>
    %82 = arith.select %54, %33, %81 : vector<8x128xi1>, vector<8x128xf32>
    %83 = arith.select %52, %24, %82 : vector<8x128xi1>, vector<8x128xf32>
    %84 = arith.select %50, %12, %83 : vector<8x128xi1>, vector<8x128xf32>
    %85 = arith.select %58, %37, %38 : vector<8x128xi1>, vector<8x128xf32>
    %86 = arith.select %56, %33, %85 : vector<8x128xi1>, vector<8x128xf32>
    %87 = arith.select %54, %24, %86 : vector<8x128xi1>, vector<8x128xf32>
    %88 = arith.select %52, %12, %87 : vector<8x128xi1>, vector<8x128xf32>
    %89 = arith.select %60, %37, %38 : vector<8x128xi1>, vector<8x128xf32>
    %90 = arith.select %58, %33, %89 : vector<8x128xi1>, vector<8x128xf32>
    %91 = arith.select %56, %24, %90 : vector<8x128xi1>, vector<8x128xf32>
    %92 = arith.select %54, %12, %91 : vector<8x128xi1>, vector<8x128xf32>
    %93 = arith.negf %0 : vector<8x128xf32>
    %94 = math.exp %93 : vector<8x128xf32>
    %cst_26 = arith.constant 1.000000e+00 : f32
    %95 = vector.broadcast %cst_26 : f32 to vector<8x128xf32>
    %96 = arith.addf %95, %94 : vector<8x128xf32>
    %97 = arith.divf %95, %96 : vector<8x128xf32>
    %98 = arith.mulf %0, %97 : vector<8x128xf32>
    %99 = tpu.concatenate %98, %64, %68, %72, %76, %80, %84, %88, %92 in 1 : vector<8x128xf32>, vector<8x128xf32>, vector<8x128xf32>, vector<8x128xf32>, vector<8x128xf32>, vector<8x128xf32>, vector<8x128xf32>, vector<8x128xf32>, vector<8x128xf32> -> vector<8x1152xf32>
    %c0_27 = arith.constant 0 : index
    %c0_28 = arith.constant 0 : index
    %100 = vector.load %arg2[%c0_27, %c0_28] : memref<1152x128xf32, #tpu.memory_space<vmem>>, vector<1152x128xf32>
    %cst_29 = arith.constant dense<0.000000e+00> : vector<8x128xf32>
    %101 = tpu.matmul %99, %100, %cst_29 {dimension_numbers = #tpu.dot_dimension_numbers<[1], [0], [0], [1], [0, 0, 1, 1], [], []>} : vector<8x1152xf32>, vector<1152x128xf32>, vector<8x128xf32> -> vector<8x128xf32>
    %c0_30 = arith.constant 0 : index
    %c0_31 = arith.constant 0 : index
    %102 = vector.load %arg3[%c0_30, %c0_31] : memref<1x128xf32, #tpu.memory_space<vmem>>, vector<1x128xf32>
    %103 = vector.broadcast %102 : vector<1x128xf32> to vector<8x128xf32>
    %104 = arith.addf %101, %103 : vector<8x128xf32>
    %cst_32 = arith.constant -2.200000e+00 : f32
    %105 = vector.broadcast %cst_32 : f32 to vector<8x128xf32>
    %106 = arith.subf %104, %105 : vector<8x128xf32>
    %cst_33 = arith.constant 2.500000e+00 : f32
    %107 = vector.broadcast %cst_33 : f32 to vector<8x128xf32>
    %108 = arith.mulf %106, %107 : vector<8x128xf32>
    %109 = math.floor %108 : vector<8x128xf32>
    %110 = arith.subf %108, %109 : vector<8x128xf32>
    %111 = arith.mulf %110, %110 : vector<8x128xf32>
    %112 = arith.mulf %111, %110 : vector<8x128xf32>
    %cst_34 = arith.constant 1.000000e+00 : f32
    %113 = vector.broadcast %cst_34 : f32 to vector<8x128xf32>
    %114 = arith.subf %113, %110 : vector<8x128xf32>
    %cst_35 = arith.constant 0.166666672 : f32
    %115 = vector.broadcast %cst_35 : f32 to vector<8x128xf32>
    %116 = arith.mulf %112, %115 : vector<8x128xf32>
    %cst_36 = arith.constant -3.000000e+00 : f32
    %117 = vector.broadcast %cst_36 : f32 to vector<8x128xf32>
    %118 = arith.mulf %112, %117 : vector<8x128xf32>
    %cst_37 = arith.constant 3.000000e+00 : f32
    %119 = vector.broadcast %cst_37 : f32 to vector<8x128xf32>
    %120 = arith.mulf %111, %119 : vector<8x128xf32>
    %121 = arith.addf %118, %120 : vector<8x128xf32>
    %cst_38 = arith.constant 3.000000e+00 : f32
    %122 = vector.broadcast %cst_38 : f32 to vector<8x128xf32>
    %123 = arith.mulf %110, %122 : vector<8x128xf32>
    %124 = arith.addf %121, %123 : vector<8x128xf32>
    %cst_39 = arith.constant 1.000000e+00 : f32
    %125 = vector.broadcast %cst_39 : f32 to vector<8x128xf32>
    %126 = arith.addf %124, %125 : vector<8x128xf32>
    %cst_40 = arith.constant 0.166666672 : f32
    %127 = vector.broadcast %cst_40 : f32 to vector<8x128xf32>
    %128 = arith.mulf %126, %127 : vector<8x128xf32>
    %cst_41 = arith.constant 3.000000e+00 : f32
    %129 = vector.broadcast %cst_41 : f32 to vector<8x128xf32>
    %130 = arith.mulf %112, %129 : vector<8x128xf32>
    %cst_42 = arith.constant -6.000000e+00 : f32
    %131 = vector.broadcast %cst_42 : f32 to vector<8x128xf32>
    %132 = arith.mulf %111, %131 : vector<8x128xf32>
    %133 = arith.addf %130, %132 : vector<8x128xf32>
    %cst_43 = arith.constant 4.000000e+00 : f32
    %134 = vector.broadcast %cst_43 : f32 to vector<8x128xf32>
    %135 = arith.addf %133, %134 : vector<8x128xf32>
    %cst_44 = arith.constant 0.166666672 : f32
    %136 = vector.broadcast %cst_44 : f32 to vector<8x128xf32>
    %137 = arith.mulf %135, %136 : vector<8x128xf32>
    %138 = arith.mulf %114, %114 : vector<8x128xf32>
    %139 = arith.mulf %138, %114 : vector<8x128xf32>
    %cst_45 = arith.constant 0.166666672 : f32
    %140 = vector.broadcast %cst_45 : f32 to vector<8x128xf32>
    %141 = arith.mulf %139, %140 : vector<8x128xf32>
    %cst_46 = arith.constant 0.000000e+00 : f32
    %142 = vector.broadcast %cst_46 : f32 to vector<8x128xf32>
    %cst_47 = arith.constant 0.000000e+00 : f32
    %143 = vector.broadcast %cst_47 : f32 to vector<8x128xf32>
    %144 = arith.cmpf oeq, %109, %143 : vector<8x128xf32>
    %cst_48 = arith.constant 1.000000e+00 : f32
    %145 = vector.broadcast %cst_48 : f32 to vector<8x128xf32>
    %146 = arith.cmpf oeq, %109, %145 : vector<8x128xf32>
    %cst_49 = arith.constant 2.000000e+00 : f32
    %147 = vector.broadcast %cst_49 : f32 to vector<8x128xf32>
    %148 = arith.cmpf oeq, %109, %147 : vector<8x128xf32>
    %cst_50 = arith.constant 3.000000e+00 : f32
    %149 = vector.broadcast %cst_50 : f32 to vector<8x128xf32>
    %150 = arith.cmpf oeq, %109, %149 : vector<8x128xf32>
    %cst_51 = arith.constant 4.000000e+00 : f32
    %151 = vector.broadcast %cst_51 : f32 to vector<8x128xf32>
    %152 = arith.cmpf oeq, %109, %151 : vector<8x128xf32>
    %cst_52 = arith.constant 5.000000e+00 : f32
    %153 = vector.broadcast %cst_52 : f32 to vector<8x128xf32>
    %154 = arith.cmpf oeq, %109, %153 : vector<8x128xf32>
    %cst_53 = arith.constant 6.000000e+00 : f32
    %155 = vector.broadcast %cst_53 : f32 to vector<8x128xf32>
    %156 = arith.cmpf oeq, %109, %155 : vector<8x128xf32>
    %cst_54 = arith.constant 7.000000e+00 : f32
    %157 = vector.broadcast %cst_54 : f32 to vector<8x128xf32>
    %158 = arith.cmpf oeq, %109, %157 : vector<8x128xf32>
    %cst_55 = arith.constant 8.000000e+00 : f32
    %159 = vector.broadcast %cst_55 : f32 to vector<8x128xf32>
    %160 = arith.cmpf oeq, %109, %159 : vector<8x128xf32>
    %cst_56 = arith.constant 9.000000e+00 : f32
    %161 = vector.broadcast %cst_56 : f32 to vector<8x128xf32>
    %162 = arith.cmpf oeq, %109, %161 : vector<8x128xf32>
    %cst_57 = arith.constant 1.000000e+01 : f32
    %163 = vector.broadcast %cst_57 : f32 to vector<8x128xf32>
    %164 = arith.cmpf oeq, %109, %163 : vector<8x128xf32>
    %165 = arith.select %150, %141, %142 : vector<8x128xi1>, vector<8x128xf32>
    %166 = arith.select %148, %137, %165 : vector<8x128xi1>, vector<8x128xf32>
    %167 = arith.select %146, %128, %166 : vector<8x128xi1>, vector<8x128xf32>
    %168 = arith.select %144, %116, %167 : vector<8x128xi1>, vector<8x128xf32>
    %169 = arith.select %152, %141, %142 : vector<8x128xi1>, vector<8x128xf32>
    %170 = arith.select %150, %137, %169 : vector<8x128xi1>, vector<8x128xf32>
    %171 = arith.select %148, %128, %170 : vector<8x128xi1>, vector<8x128xf32>
    %172 = arith.select %146, %116, %171 : vector<8x128xi1>, vector<8x128xf32>
    %173 = arith.select %154, %141, %142 : vector<8x128xi1>, vector<8x128xf32>
    %174 = arith.select %152, %137, %173 : vector<8x128xi1>, vector<8x128xf32>
    %175 = arith.select %150, %128, %174 : vector<8x128xi1>, vector<8x128xf32>
    %176 = arith.select %148, %116, %175 : vector<8x128xi1>, vector<8x128xf32>
    %177 = arith.select %156, %141, %142 : vector<8x128xi1>, vector<8x128xf32>
    %178 = arith.select %154, %137, %177 : vector<8x128xi1>, vector<8x128xf32>
    %179 = arith.select %152, %128, %178 : vector<8x128xi1>, vector<8x128xf32>
    %180 = arith.select %150, %116, %179 : vector<8x128xi1>, vector<8x128xf32>
    %181 = arith.select %158, %141, %142 : vector<8x128xi1>, vector<8x128xf32>
    %182 = arith.select %156, %137, %181 : vector<8x128xi1>, vector<8x128xf32>
    %183 = arith.select %154, %128, %182 : vector<8x128xi1>, vector<8x128xf32>
    %184 = arith.select %152, %116, %183 : vector<8x128xi1>, vector<8x128xf32>
    %185 = arith.select %160, %141, %142 : vector<8x128xi1>, vector<8x128xf32>
    %186 = arith.select %158, %137, %185 : vector<8x128xi1>, vector<8x128xf32>
    %187 = arith.select %156, %128, %186 : vector<8x128xi1>, vector<8x128xf32>
    %188 = arith.select %154, %116, %187 : vector<8x128xi1>, vector<8x128xf32>
    %189 = arith.select %162, %141, %142 : vector<8x128xi1>, vector<8x128xf32>
    %190 = arith.select %160, %137, %189 : vector<8x128xi1>, vector<8x128xf32>
    %191 = arith.select %158, %128, %190 : vector<8x128xi1>, vector<8x128xf32>
    %192 = arith.select %156, %116, %191 : vector<8x128xi1>, vector<8x128xf32>
    %193 = arith.select %164, %141, %142 : vector<8x128xi1>, vector<8x128xf32>
    %194 = arith.select %162, %137, %193 : vector<8x128xi1>, vector<8x128xf32>
    %195 = arith.select %160, %128, %194 : vector<8x128xi1>, vector<8x128xf32>
    %196 = arith.select %158, %116, %195 : vector<8x128xi1>, vector<8x128xf32>
    %197 = arith.negf %104 : vector<8x128xf32>
    %198 = math.exp %197 : vector<8x128xf32>
    %cst_58 = arith.constant 1.000000e+00 : f32
    %199 = vector.broadcast %cst_58 : f32 to vector<8x128xf32>
    %200 = arith.addf %199, %198 : vector<8x128xf32>
    %201 = arith.divf %199, %200 : vector<8x128xf32>
    %202 = arith.mulf %104, %201 : vector<8x128xf32>
    %203 = tpu.concatenate %202, %168, %172, %176, %180, %184, %188, %192, %196 in 1 : vector<8x128xf32>, vector<8x128xf32>, vector<8x128xf32>, vector<8x128xf32>, vector<8x128xf32>, vector<8x128xf32>, vector<8x128xf32>, vector<8x128xf32>, vector<8x128xf32> -> vector<8x1152xf32>
    %c0_59 = arith.constant 0 : index
    %c0_60 = arith.constant 0 : index
    %204 = vector.load %arg4[%c0_59, %c0_60] : memref<1152x128xf32, #tpu.memory_space<vmem>>, vector<1152x128xf32>
    %cst_61 = arith.constant dense<0.000000e+00> : vector<8x128xf32>
    %205 = tpu.matmul %203, %204, %cst_61 {dimension_numbers = #tpu.dot_dimension_numbers<[1], [0], [0], [1], [0, 0, 1, 1], [], []>} : vector<8x1152xf32>, vector<1152x128xf32>, vector<8x128xf32> -> vector<8x128xf32>
    %c0_62 = arith.constant 0 : index
    %c0_63 = arith.constant 0 : index
    %206 = vector.load %arg5[%c0_62, %c0_63] : memref<1x128xf32, #tpu.memory_space<vmem>>, vector<1x128xf32>
    %207 = vector.broadcast %206 : vector<1x128xf32> to vector<8x128xf32>
    %208 = arith.addf %205, %207 : vector<8x128xf32>
    %cst_64 = arith.constant -2.200000e+00 : f32
    %209 = vector.broadcast %cst_64 : f32 to vector<8x128xf32>
    %210 = arith.subf %208, %209 : vector<8x128xf32>
    %cst_65 = arith.constant 2.500000e+00 : f32
    %211 = vector.broadcast %cst_65 : f32 to vector<8x128xf32>
    %212 = arith.mulf %210, %211 : vector<8x128xf32>
    %213 = math.floor %212 : vector<8x128xf32>
    %214 = arith.subf %212, %213 : vector<8x128xf32>
    %215 = arith.mulf %214, %214 : vector<8x128xf32>
    %216 = arith.mulf %215, %214 : vector<8x128xf32>
    %cst_66 = arith.constant 1.000000e+00 : f32
    %217 = vector.broadcast %cst_66 : f32 to vector<8x128xf32>
    %218 = arith.subf %217, %214 : vector<8x128xf32>
    %cst_67 = arith.constant 0.166666672 : f32
    %219 = vector.broadcast %cst_67 : f32 to vector<8x128xf32>
    %220 = arith.mulf %216, %219 : vector<8x128xf32>
    %cst_68 = arith.constant -3.000000e+00 : f32
    %221 = vector.broadcast %cst_68 : f32 to vector<8x128xf32>
    %222 = arith.mulf %216, %221 : vector<8x128xf32>
    %cst_69 = arith.constant 3.000000e+00 : f32
    %223 = vector.broadcast %cst_69 : f32 to vector<8x128xf32>
    %224 = arith.mulf %215, %223 : vector<8x128xf32>
    %225 = arith.addf %222, %224 : vector<8x128xf32>
    %cst_70 = arith.constant 3.000000e+00 : f32
    %226 = vector.broadcast %cst_70 : f32 to vector<8x128xf32>
    %227 = arith.mulf %214, %226 : vector<8x128xf32>
    %228 = arith.addf %225, %227 : vector<8x128xf32>
    %cst_71 = arith.constant 1.000000e+00 : f32
    %229 = vector.broadcast %cst_71 : f32 to vector<8x128xf32>
    %230 = arith.addf %228, %229 : vector<8x128xf32>
    %cst_72 = arith.constant 0.166666672 : f32
    %231 = vector.broadcast %cst_72 : f32 to vector<8x128xf32>
    %232 = arith.mulf %230, %231 : vector<8x128xf32>
    %cst_73 = arith.constant 3.000000e+00 : f32
    %233 = vector.broadcast %cst_73 : f32 to vector<8x128xf32>
    %234 = arith.mulf %216, %233 : vector<8x128xf32>
    %cst_74 = arith.constant -6.000000e+00 : f32
    %235 = vector.broadcast %cst_74 : f32 to vector<8x128xf32>
    %236 = arith.mulf %215, %235 : vector<8x128xf32>
    %237 = arith.addf %234, %236 : vector<8x128xf32>
    %cst_75 = arith.constant 4.000000e+00 : f32
    %238 = vector.broadcast %cst_75 : f32 to vector<8x128xf32>
    %239 = arith.addf %237, %238 : vector<8x128xf32>
    %cst_76 = arith.constant 0.166666672 : f32
    %240 = vector.broadcast %cst_76 : f32 to vector<8x128xf32>
    %241 = arith.mulf %239, %240 : vector<8x128xf32>
    %242 = arith.mulf %218, %218 : vector<8x128xf32>
    %243 = arith.mulf %242, %218 : vector<8x128xf32>
    %cst_77 = arith.constant 0.166666672 : f32
    %244 = vector.broadcast %cst_77 : f32 to vector<8x128xf32>
    %245 = arith.mulf %243, %244 : vector<8x128xf32>
    %cst_78 = arith.constant 0.000000e+00 : f32
    %246 = vector.broadcast %cst_78 : f32 to vector<8x128xf32>
    %cst_79 = arith.constant 0.000000e+00 : f32
    %247 = vector.broadcast %cst_79 : f32 to vector<8x128xf32>
    %248 = arith.cmpf oeq, %213, %247 : vector<8x128xf32>
    %cst_80 = arith.constant 1.000000e+00 : f32
    %249 = vector.broadcast %cst_80 : f32 to vector<8x128xf32>
    %250 = arith.cmpf oeq, %213, %249 : vector<8x128xf32>
    %cst_81 = arith.constant 2.000000e+00 : f32
    %251 = vector.broadcast %cst_81 : f32 to vector<8x128xf32>
    %252 = arith.cmpf oeq, %213, %251 : vector<8x128xf32>
    %cst_82 = arith.constant 3.000000e+00 : f32
    %253 = vector.broadcast %cst_82 : f32 to vector<8x128xf32>
    %254 = arith.cmpf oeq, %213, %253 : vector<8x128xf32>
    %cst_83 = arith.constant 4.000000e+00 : f32
    %255 = vector.broadcast %cst_83 : f32 to vector<8x128xf32>
    %256 = arith.cmpf oeq, %213, %255 : vector<8x128xf32>
    %cst_84 = arith.constant 5.000000e+00 : f32
    %257 = vector.broadcast %cst_84 : f32 to vector<8x128xf32>
    %258 = arith.cmpf oeq, %213, %257 : vector<8x128xf32>
    %cst_85 = arith.constant 6.000000e+00 : f32
    %259 = vector.broadcast %cst_85 : f32 to vector<8x128xf32>
    %260 = arith.cmpf oeq, %213, %259 : vector<8x128xf32>
    %cst_86 = arith.constant 7.000000e+00 : f32
    %261 = vector.broadcast %cst_86 : f32 to vector<8x128xf32>
    %262 = arith.cmpf oeq, %213, %261 : vector<8x128xf32>
    %cst_87 = arith.constant 8.000000e+00 : f32
    %263 = vector.broadcast %cst_87 : f32 to vector<8x128xf32>
    %264 = arith.cmpf oeq, %213, %263 : vector<8x128xf32>
    %cst_88 = arith.constant 9.000000e+00 : f32
    %265 = vector.broadcast %cst_88 : f32 to vector<8x128xf32>
    %266 = arith.cmpf oeq, %213, %265 : vector<8x128xf32>
    %cst_89 = arith.constant 1.000000e+01 : f32
    %267 = vector.broadcast %cst_89 : f32 to vector<8x128xf32>
    %268 = arith.cmpf oeq, %213, %267 : vector<8x128xf32>
    %269 = arith.select %254, %245, %246 : vector<8x128xi1>, vector<8x128xf32>
    %270 = arith.select %252, %241, %269 : vector<8x128xi1>, vector<8x128xf32>
    %271 = arith.select %250, %232, %270 : vector<8x128xi1>, vector<8x128xf32>
    %272 = arith.select %248, %220, %271 : vector<8x128xi1>, vector<8x128xf32>
    %273 = arith.select %256, %245, %246 : vector<8x128xi1>, vector<8x128xf32>
    %274 = arith.select %254, %241, %273 : vector<8x128xi1>, vector<8x128xf32>
    %275 = arith.select %252, %232, %274 : vector<8x128xi1>, vector<8x128xf32>
    %276 = arith.select %250, %220, %275 : vector<8x128xi1>, vector<8x128xf32>
    %277 = arith.select %258, %245, %246 : vector<8x128xi1>, vector<8x128xf32>
    %278 = arith.select %256, %241, %277 : vector<8x128xi1>, vector<8x128xf32>
    %279 = arith.select %254, %232, %278 : vector<8x128xi1>, vector<8x128xf32>
    %280 = arith.select %252, %220, %279 : vector<8x128xi1>, vector<8x128xf32>
    %281 = arith.select %260, %245, %246 : vector<8x128xi1>, vector<8x128xf32>
    %282 = arith.select %258, %241, %281 : vector<8x128xi1>, vector<8x128xf32>
    %283 = arith.select %256, %232, %282 : vector<8x128xi1>, vector<8x128xf32>
    %284 = arith.select %254, %220, %283 : vector<8x128xi1>, vector<8x128xf32>
    %285 = arith.select %262, %245, %246 : vector<8x128xi1>, vector<8x128xf32>
    %286 = arith.select %260, %241, %285 : vector<8x128xi1>, vector<8x128xf32>
    %287 = arith.select %258, %232, %286 : vector<8x128xi1>, vector<8x128xf32>
    %288 = arith.select %256, %220, %287 : vector<8x128xi1>, vector<8x128xf32>
    %289 = arith.select %264, %245, %246 : vector<8x128xi1>, vector<8x128xf32>
    %290 = arith.select %262, %241, %289 : vector<8x128xi1>, vector<8x128xf32>
    %291 = arith.select %260, %232, %290 : vector<8x128xi1>, vector<8x128xf32>
    %292 = arith.select %258, %220, %291 : vector<8x128xi1>, vector<8x128xf32>
    %293 = arith.select %266, %245, %246 : vector<8x128xi1>, vector<8x128xf32>
    %294 = arith.select %264, %241, %293 : vector<8x128xi1>, vector<8x128xf32>
    %295 = arith.select %262, %232, %294 : vector<8x128xi1>, vector<8x128xf32>
    %296 = arith.select %260, %220, %295 : vector<8x128xi1>, vector<8x128xf32>
    %297 = arith.select %268, %245, %246 : vector<8x128xi1>, vector<8x128xf32>
    %298 = arith.select %266, %241, %297 : vector<8x128xi1>, vector<8x128xf32>
    %299 = arith.select %264, %232, %298 : vector<8x128xi1>, vector<8x128xf32>
    %300 = arith.select %262, %220, %299 : vector<8x128xi1>, vector<8x128xf32>
    %301 = arith.negf %208 : vector<8x128xf32>
    %302 = math.exp %301 : vector<8x128xf32>
    %cst_90 = arith.constant 1.000000e+00 : f32
    %303 = vector.broadcast %cst_90 : f32 to vector<8x128xf32>
    %304 = arith.addf %303, %302 : vector<8x128xf32>
    %305 = arith.divf %303, %304 : vector<8x128xf32>
    %306 = arith.mulf %208, %305 : vector<8x128xf32>
    %307 = tpu.concatenate %306, %272, %276, %280, %284, %288, %292, %296, %300 in 1 : vector<8x128xf32>, vector<8x128xf32>, vector<8x128xf32>, vector<8x128xf32>, vector<8x128xf32>, vector<8x128xf32>, vector<8x128xf32>, vector<8x128xf32>, vector<8x128xf32> -> vector<8x1152xf32>
    %c0_91 = arith.constant 0 : index
    %c0_92 = arith.constant 0 : index
    %308 = vector.load %arg6[%c0_91, %c0_92] : memref<1152x128xf32, #tpu.memory_space<vmem>>, vector<1152x128xf32>
    %cst_93 = arith.constant dense<0.000000e+00> : vector<8x128xf32>
    %309 = tpu.matmul %307, %308, %cst_93 {dimension_numbers = #tpu.dot_dimension_numbers<[1], [0], [0], [1], [0, 0, 1, 1], [], []>} : vector<8x1152xf32>, vector<1152x128xf32>, vector<8x128xf32> -> vector<8x128xf32>
    %c0_94 = arith.constant 0 : index
    %c0_95 = arith.constant 0 : index
    %310 = vector.load %arg7[%c0_94, %c0_95] : memref<8x128xf32, #tpu.memory_space<vmem>>, vector<8x128xf32>
    tpu.vector_store %arg7[%c0_94, %c0_95], %309 {strides = array<i32>} : memref<8x128xf32, #tpu.memory_space<vmem>>, vector<8x128xf32>,
    return
  }
  func.func @transform_0(%arg0: i32) -> (i32, i32) {
    %c0_i32 = arith.constant 0 : i32
    %c0_i32_0 = arith.constant 0 : i32
    return %arg0, %c0_i32 : i32, i32
  }
  func.func @transform_1(%arg0: i32) -> (i32, i32) {
    %c0_i32 = arith.constant 0 : i32
    %c0_i32_0 = arith.constant 0 : i32
    %c0_i32_1 = arith.constant 0 : i32
    return %c0_i32, %c0_i32_0 : i32, i32
  }
  func.func @transform_2(%arg0: i32) -> (i32, i32) {
    %c0_i32 = arith.constant 0 : i32
    %c0_i32_0 = arith.constant 0 : i32
    %c0_i32_1 = arith.constant 0 : i32
    return %c0_i32, %c0_i32_0 : i32, i32
  }
  func.func @transform_3(%arg0: i32) -> (i32, i32) {
    %c0_i32 = arith.constant 0 : i32
    %c0_i32_0 = arith.constant 0 : i32
    %c0_i32_1 = arith.constant 0 : i32
    return %c0_i32, %c0_i32_0 : i32, i32
  }
  func.func @transform_4(%arg0: i32) -> (i32, i32) {
    %c0_i32 = arith.constant 0 : i32
    %c0_i32_0 = arith.constant 0 : i32
    %c0_i32_1 = arith.constant 0 : i32
    return %c0_i32, %c0_i32_0 : i32, i32
  }
  func.func @transform_5(%arg0: i32) -> (i32, i32) {
    %c0_i32 = arith.constant 0 : i32
    %c0_i32_0 = arith.constant 0 : i32
    %c0_i32_1 = arith.constant 0 : i32
    return %c0_i32, %c0_i32_0 : i32, i32
  }
  func.func @transform_6(%arg0: i32) -> (i32, i32) {
    %c0_i32 = arith.constant 0 : i32
    %c0_i32_0 = arith.constant 0 : i32
    return %arg0, %c0_i32 : i32, i32
  }
}

</mosaic_0001>

<bundles_post_ra>
// kernel: tpu_custom_call.1
= control target key start
LH: loop header
LB: loop body
LE: loop exit
PB: predicated region body
PF: predicated region fallthrough
CT: control target
= control target key end

     0   :  { %11 = vsyncpa [#allocation3], 0  ;;  %s3517_s0 = inlined_call_operand.hbm [shape: f32[8,128], index: 0, kind: input, shape index: {}]   ;;  %s3518_s1 = inlined_call_operand.hbm [shape: f32[1152,128], index: 1, kind: input, shape index: {}]   ;;  %s3519_s2 = inlined_call_operand.vmem [shape: f32[1,128], index: 2, kind: input, shape index: {}]   ;;  %s3520_s3 = inlined_call_operand.hbm [shape: f32[1152,128], index: 3, kind: input, shape index: {}]   ;;  %s3521_s4 = inlined_call_operand.vmem [shape: f32[1,128], index: 4, kind: input, shape index: {}]   ;;  %s3522_s5 = inlined_call_operand.hbm [shape: f32[1152,128], index: 5, kind: input, shape index: {}]   ;;  %s3523_s6 = inlined_call_operand.hbm [shape: f32[8,128], index: 6, kind: output, shape index: {}]  }
   0x1   :  { %12 = vsyncpa [#allocation6], 0 }
   0x2   :  { %13 = vsyncpa [#allocation9], 0 }
   0x3   :  { %14 = vsyncpa [#allocation4], 0  ;;  %s2991_s21 = smov [#allocation5]   ;;  %s2873_s25 = scalar_lea.hbm %s3518_s1, 18432 }
   0x4   :  { %s30_s22 = sshll.u32 %s2991_s21, 4  ;;  %p2874_p0 = scmp.ne.s32.totalorder %s3518_s1, %s2873_s25  ;;  %s31_s22 = int_to_ptr.vmem [resolvable:$true] %s30_s22 }
   0x5   :  { %p2877_p1 = scmp.lt.u32.totalorder %s2873_s25, %s3518_s1 }
   0x7   :  { %p2879_p2 = pnand %p2877_p1, %p2874_p0 }
   0x9   :  { %2882 = shalt.err (!%p2879_p2)
}
   0xa   :  { %s2883_s30 = scalar_lea.vmem %s31_s22, 18432  ;;  %p2888_p4 = scmp.lt.s32.totalorder %s31_s22, %s31_s22 }
   0xb   :  { %p2884_p3 = scmp.ne.s32.totalorder %s31_s22, %s2883_s30  ;;  %p2889_p5 = scmp.lt.s32.totalorder %s2883_s30, %s2883_s30 }
   0xd   :  { %p2890_p6 = por %p2889_p5, %p2888_p4 }
   0xf   :  { %p2891_p7 = pnand %p2890_p6, %p2884_p3 }
  0x11   :  { %2894 = shalt.err (!%p2891_p7)
}
  0x12   :  { %s2992_s7 = smov 128   ;;  %s2993_s8 = smov 8  }
  0x13   :  { %36 = dma.hbm_to_vmem [thread:$0]  %s3518_s1, 18432, %s31_s22, [#allocation6], %s2992_s7, %s2992_s7, %s2993_s8  }
  0x14   :  { %s2994_s11 = smov [#allocation2]   ;;  %s2995_s13 = smov [#allocation7]  }
  0x15   :  { %s21_s12 = sshll.u32 %s2994_s11, 4  ;;  %s44_s14 = sshll.u32 %s2995_s13, 4  ;;  %s22_s12 = int_to_ptr.vmem [resolvable:$true] %s21_s12  ;;  %s45_s14 = int_to_ptr.vmem [resolvable:$true] %s44_s14 }
  0x16   :  { %s2895_s17 = scalar_lea.hbm %s3517_s0, 128 }
  0x17   :  { %p2896_p8 = scmp.ne.s32.totalorder %s3517_s0, %s2895_s17  ;;  %p2899_p9 = scmp.lt.u32.totalorder %s2895_s17, %s3517_s0 }
  0x19   :  { %p2901_p10 = pnand %p2899_p9, %p2896_p8 }
  0x1b   :  { %2904 = shalt.err (!%p2901_p10)
}
  0x1c   :  { %s2905_s1 = scalar_lea.vmem %s22_s12, 128  ;;  %p2910_p12 = scmp.lt.s32.totalorder %s22_s12, %s22_s12 }
  0x1d   :  { %p2906_p11 = scmp.ne.s32.totalorder %s22_s12, %s2905_s1  ;;  %p2911_p13 = scmp.lt.s32.totalorder %s2905_s1, %s2905_s1 }
  0x1f   :  { %p2912_p0 = por %p2911_p13, %p2910_p12 }
  0x21   :  { %p2913_p1 = pnand %p2912_p0, %p2906_p11 }
  0x23   :  { %2916 = shalt.err (!%p2913_p1)
}
  0x24   :  { %24 = dma.hbm_to_vmem [thread:$0]  %s3517_s0, 128, %s22_s12, [#allocation3]  }
  0x25   :  { %s2917_s26 = scalar_lea.hbm %s3520_s3, 18432 }
  0x26   :  { %p2918_p2 = scmp.ne.s32.totalorder %s3520_s3, %s2917_s26  ;;  %p2921_p3 = scmp.lt.u32.totalorder %s2917_s26, %s3520_s3 }
  0x28   :  { %p2923_p4 = pnand %p2921_p3, %p2918_p2 }
  0x2a   :  { %2926 = shalt.err (!%p2923_p4)
}
  0x2b   :  { %s2927_s9 = scalar_lea.vmem %s45_s14, 18432  ;;  %p2932_p6 = scmp.lt.s32.totalorder %s45_s14, %s45_s14 }
  0x2c   :  { %p2928_p5 = scmp.ne.s32.totalorder %s45_s14, %s2927_s9  ;;  %p2933_p7 = scmp.lt.s32.totalorder %s2927_s9, %s2927_s9 }
  0x2e   :  { %p2934_p8 = por %p2933_p7, %p2932_p6 }
  0x30   :  { %p2935_p9 = pnand %p2934_p8, %p2928_p5 }
  0x32   :  { %2938 = shalt.err (!%p2935_p9)
}
  0x33   :  { %50 = dma.hbm_to_vmem [thread:$0]  %s3520_s3, 18432, %s45_s14, [#allocation6], %s2992_s7, %s2992_s7, %s2993_s8  }
  0x34   :  { %s2996_s11 = smov [#allocation8]   ;;  %s2939_s16 = scalar_lea.hbm %s3522_s5, 18432 }
  0x35   :  { %s58_s12 = sshll.u32 %s2996_s11, 4  ;;  %p2940_p10 = scmp.ne.s32.totalorder %s3522_s5, %s2939_s16  ;;  %s59_s12 = int_to_ptr.vmem [resolvable:$true] %s58_s12 }
  0x36   :  { %p2943_p11 = scmp.lt.u32.totalorder %s2939_s16, %s3522_s5 }
  0x38   :  { %p2945_p12 = pnand %p2943_p11, %p2940_p10 }
  0x3a   :  { %2948 = shalt.err (!%p2945_p12)
}
  0x3b   :  { %s2949_s21 = scalar_lea.vmem %s59_s12, 18432  ;;  %p2954_p0 = scmp.lt.s32.totalorder %s59_s12, %s59_s12 }
  0x3c   :  { %p2950_p13 = scmp.ne.s32.totalorder %s59_s12, %s2949_s21  ;;  %p2955_p1 = scmp.lt.s32.totalorder %s2949_s21, %s2949_s21 }
  0x3e   :  { %p2956_p2 = por %p2955_p1, %p2954_p0 }
  0x40   :  { %p2957_p3 = pnand %p2956_p2, %p2950_p13 }
  0x42   :  { %2960 = shalt.err (!%p2957_p3)
}
  0x43   :  { %64 = dma.hbm_to_vmem [thread:$0]  %s3522_s5, 18432, %s59_s12, [#allocation9], %s2992_s7, %s2992_s7, %s2993_s8  }
  0x44   :  { %2983 = dma.done.wait [#allocation3], 128  }
  0x45   :  { %2984 = vsyncadd [#allocation3], 4294967168 }
  0x46   :  { %2985 = dma.done.wait [#allocation6], 36864  }
  0x47   :  { %2986 = vsyncadd [#allocation6], 4294930432 }
  0x48   :  { %2987 = dma.done.wait [#allocation9], 18432  }
  0x49   :  { %2988 = vsyncadd [#allocation9], 4294948864  ;;  %v167_v0 = vld [vmem:[#allocation5 + $0x80] sm:$0xff]  ;;  %v168_v1 = vld [vmem:[#allocation5 + $0x88] sm:$0xff]  ;;  %vm2998_vm11 = vmmov 0  }
  0x4a   :  { %v151_v2 = vld [vmem:[#allocation5] sm:$0xff]  ;;  %v2395_v3 = vpack.c.bf16 %v168_v1, %v167_v0  ;;  %v152_v4 = vld [vmem:[#allocation5 + $0x8] sm:$0xff]  ;;  %v169_v11 = vld [vmem:[#allocation5 + $0x90] sm:$0xff] }
  0x4b   :  { %v199_v5 = vld [vmem:[#allocation5 + $0x180] sm:$0xff]  ;;  %v200_v6 = vld [vmem:[#allocation5 + $0x188] sm:$0xff]  ;;  %v2397_v7 = vpack.c.bf16 %v152_v4, %v151_v2  ;;  %v170_v13 = vld [vmem:[#allocation5 + $0x98] sm:$0xff] }
  0x4c   :  { %v2427_v8 = vpack.c.bf16 %v200_v6, %v199_v5  ;;  %v183_v9 = vld [vmem:[#allocation5 + $0x100] sm:$0xff]  ;;  %v184_v10 = vld [vmem:[#allocation5 + $0x108] sm:$0xff]  ;;  %2396 = vmatprep.subr.bf16.mxu0 %v2395_v3  ;;  %v153_v14 = vld [vmem:[#allocation5 + $0x10] sm:$0xff]  ;;  %v2399_v16 = vpack.c.bf16 %v170_v13, %v169_v11 }
  0x4d   :  { %v2429_v12 = vpack.c.bf16 %v184_v10, %v183_v9  ;;  %v154_v15 = vld [vmem:[#allocation5 + $0x18] sm:$0xff]  ;;  %2398 = vmatpush3.bf16.msra.mxu0 %v2397_v7  ;;  %v201_v18 = vld [vmem:[#allocation5 + $0x190] sm:$0xff]  ;;  %v171_v23 = vld [vmem:[#allocation5 + $0xa0] sm:$0xff] }
  0x4e   :  { %2428 = vmatprep.subr.bf16.mxu1 %v2427_v8  ;;  %v2401_v17 = vpack.c.bf16 %v154_v15, %v153_v14  ;;  %v202_v19 = vld [vmem:[#allocation5 + $0x198] sm:$0xff]  ;;  %v185_v20 = vld [vmem:[#allocation5 + $0x110] sm:$0xff]  ;;  %v172_v24 = vld [vmem:[#allocation5 + $0xa8] sm:$0xff]  ;;  %2400 = vmatprep.subr.bf16.mxu0 %v2399_v16 }
  0x4f   :  { %2430 = vmatpush3.bf16.msra.mxu1 %v2429_v12  ;;  %v2431_v21 = vpack.c.bf16 %v202_v19, %v201_v18  ;;  %v186_v22 = vld [vmem:[#allocation5 + $0x118] sm:$0xff]  ;;  %v2403_v26 = vpack.c.bf16 %v172_v24, %v171_v23  ;;  %v155_v27 = vld [vmem:[#allocation5 + $0x20] sm:$0xff]  ;;  %v156_v28 = vld [vmem:[#allocation5 + $0x28] sm:$0xff] }
  0x50   :  { %v2433_v25 = vpack.c.bf16 %v186_v22, %v185_v20  ;;  %v203_v29 = vld [vmem:[#allocation5 + $0x1a0] sm:$0xff]  ;;  %v204_v30 = vld [vmem:[#allocation5 + $0x1a8] sm:$0xff]  ;;  %v2405_v33 = vpack.c.bf16 %v156_v28, %v155_v27  ;;  %v173_v35 = vld [vmem:[#allocation5 + $0xb0] sm:$0xff] }
  0x51   :  { %2432 = vmatprep.subr.bf16.mxu1 %v2431_v21  ;;  %v187_v31 = vld [vmem:[#allocation5 + $0x120] sm:$0xff]  ;;  %v188_v32 = vld [vmem:[#allocation5 + $0x128] sm:$0xff]  ;;  %2402 = vmatpush3.bf16.msra.mxu0 %v2401_v17  ;;  %v2435_v34 = vpack.c.bf16 %v204_v30, %v203_v29  ;;  %v174_v36 = vld [vmem:[#allocation5 + $0xb8] sm:$0xff] }
  0x52   :  { %v157_v37 = vld [vmem:[#allocation5 + $0x30] sm:$0xff]  ;;  %2404 = vmatprep.subr.bf16.mxu0 %v2403_v26  ;;  %v2437_v38 = vpack.c.bf16 %v188_v32, %v187_v31  ;;  %v2407_v39 = vpack.c.bf16 %v174_v36, %v173_v35  ;;  %v158_v40 = vld [vmem:[#allocation5 + $0x38] sm:$0xff]  ;;  %v175_v46 = vld [vmem:[#allocation5 + $0xc0] sm:$0xff] }
  0x53   :  { %2434 = vmatpush3.bf16.msra.mxu1 %v2433_v25  ;;  %v205_v41 = vld [vmem:[#allocation5 + $0x1b0] sm:$0xff]  ;;  %v206_v42 = vld [vmem:[#allocation5 + $0x1b8] sm:$0xff]  ;;  %v176_v47 = vld [vmem:[#allocation5 + $0xc8] sm:$0xff]  ;;  %v2409_v48 = vpack.c.bf16 %v158_v40, %v157_v37 }
  0x54   :  { %2436 = vmatprep.subr.bf16.mxu1 %v2435_v34  ;;  %v2439_v43 = vpack.c.bf16 %v206_v42, %v205_v41  ;;  %v189_v44 = vld [vmem:[#allocation5 + $0x130] sm:$0xff]  ;;  %v190_v45 = vld [vmem:[#allocation5 + $0x138] sm:$0xff]  ;;  %v207_v49 = vld [vmem:[#allocation5 + $0x1c0] sm:$0xff]  ;;  %v2411_v52 = vpack.c.bf16 %v176_v47, %v175_v46 }
  0x55   :  { %2406 = vmatpush3.bf16.msra.mxu0 %v2405_v33  ;;  %v208_v50 = vld [vmem:[#allocation5 + $0x1c8] sm:$0xff]  ;;  %v2441_v51 = vpack.c.bf16 %v190_v45, %v189_v44  ;;  %v159_v53 = vld [vmem:[#allocation5 + $0x40] sm:$0xff]  ;;  %v177_v58 = vld [vmem:[#allocation5 + $0xd0] sm:$0xff] }
  0x56   :  { %2408 = vmatprep.subr.bf16.mxu0 %v2407_v39  ;;  %v160_v54 = vld [vmem:[#allocation5 + $0x48] sm:$0xff]  ;;  %v191_v55 = vld [vmem:[#allocation5 + $0x140] sm:$0xff]  ;;  %v2443_v56 = vpack.c.bf16 %v208_v50, %v207_v49  ;;  %v178_v59 = vld [vmem:[#allocation5 + $0xd8] sm:$0xff] }
  0x57   :  { %2438 = vmatpush3.bf16.msra.mxu1 %v2437_v38  ;;  %v192_v57 = vld [vmem:[#allocation5 + $0x148] sm:$0xff]  ;;  %v209_v60 = vld [vmem:[#allocation5 + $0x1d0] sm:$0xff]  ;;  %v210_v61 = vld [vmem:[#allocation5 + $0x1d8] sm:$0xff]  ;;  %v2413_v62 = vpack.c.bf16 %v160_v54, %v159_v53  ;;  %v2415_v0 = vpack.c.bf16 %v178_v59, %v177_v58 }
  0x58   :  { %2440 = vmatprep.subr.bf16.mxu1 %v2439_v43  ;;  %v2445_v63 = vpack.c.bf16 %v192_v57, %v191_v55  ;;  %v161_v1 = vld [vmem:[#allocation5 + $0x50] sm:$0xff]  ;;  %v162_v2 = vld [vmem:[#allocation5 + $0x58] sm:$0xff]  ;;  %v2447_v4 = vpack.c.bf16 %v210_v61, %v209_v60  ;;  %v179_v6 = vld [vmem:[#allocation5 + $0xe0] sm:$0xff] }
  0x59   :  { %2410 = vmatpush3.bf16.msra.mxu0 %v2409_v48  ;;  %v193_v3 = vld [vmem:[#allocation5 + $0x150] sm:$0xff]  ;;  %v194_v5 = vld [vmem:[#allocation5 + $0x158] sm:$0xff]  ;;  %v180_v7 = vld [vmem:[#allocation5 + $0xe8] sm:$0xff]  ;;  %v2417_v10 = vpack.c.bf16 %v162_v2, %v161_v1 }
  0x5a   :  { %2412 = vmatprep.subr.bf16.mxu0 %v2411_v52  ;;  %v211_v8 = vld [vmem:[#allocation5 + $0x1e0] sm:$0xff]  ;;  %v212_v9 = vld [vmem:[#allocation5 + $0x1e8] sm:$0xff]  ;;  %v3093_v12 = vld [vmem:[#allocation2] sm:$0xff]  ;;  %v2449_v13 = vpack.c.bf16 %v194_v5, %v193_v3  ;;  %v2419_v14 = vpack.c.bf16 %v180_v7, %v179_v6 }
  0x5b   :  { %2442 = vmatpush3.bf16.msra.mxu1 %v2441_v51  ;;  %v163_v11 = vld [vmem:[#allocation5 + $0x60] sm:$0xff]  ;;  %v164_v15 = vld [vmem:[#allocation5 + $0x68] sm:$0xff]  ;;  %v1811_v17 = vadd.f32 2.2, %v3093_v12  ;;  %v1812_v18 = vmul.f32 -1.442695, %v3093_v12  ;;  %v2451_v19 = vpack.c.bf16 %v212_v9, %v211_v8 }
  0x5c   :  { %2444 = vmatprep.subr.bf16.mxu1 %v2443_v56  ;;  %v195_v16 = vld [vmem:[#allocation5 + $0x160] sm:$0xff]  ;;  %v196_v20 = vld [vmem:[#allocation5 + $0x168] sm:$0xff]  ;;  %v181_v21 = vld [vmem:[#allocation5 + $0xf0] sm:$0xff]  ;;  %v2421_v26 = vpack.c.bf16 %v164_v15, %v163_v11 }
  0x5d   :  { %2414 = vmatpush3.bf16.msra.mxu0 %v2413_v62  ;;  %v182_v22 = vld [vmem:[#allocation5 + $0xf8] sm:$0xff]  ;;  %v213_v23 = vld [vmem:[#allocation5 + $0x1f0] sm:$0xff]  ;;  %v79_v25 = vmul.f32 2.5, %v1811_v17  ;;  %2861 = vpow2.f32 %v1812_v18  ;;  %v2453_v27 = vpack.c.bf16 %v196_v20, %v195_v16  ;;  %v231_v35 = vld [vmem:[#allocation5 + $0x280] sm:$0xff] }
  0x5e   :  { %2416 = vmatprep.subr.bf16.mxu0 %v2415_v0  ;;  %v214_v24 = vld [vmem:[#allocation5 + $0x1f8] sm:$0xff]  ;;  %v2423_v28 = vpack.c.bf16 %v182_v22, %v181_v21  ;;  %v165_v29 = vld [vmem:[#allocation5 + $0x70] sm:$0xff]  ;;  %v232_v36 = vld [vmem:[#allocation5 + $0x288] sm:$0xff] }
  0x5f   :  { %2446 = vmatpush3.bf16.msra.mxu1 %v2445_v63  ;;  %v166_v30 = vld [vmem:[#allocation5 + $0x78] sm:$0xff]  ;;  %v3097_v31 = vfloor.f32 %v79_v25  ;;  %v197_v32 = vld [vmem:[#allocation5 + $0x170] sm:$0xff]  ;;  %v2455_v33 = vpack.c.bf16 %v214_v24, %v213_v23  ;;  %v263_v38 = vld [vmem:[#allocation5 + $0x380] sm:$0xff]  ;;  %v2459_v44 = vpack.c.bf16 %v232_v36, %v231_v35 }
  0x60   :  { %2448 = vmatprep.subr.bf16.mxu1 %v2447_v4  ;;  %v198_v34 = vld [vmem:[#allocation5 + $0x178] sm:$0xff]  ;;  %v264_v39 = vld [vmem:[#allocation5 + $0x388] sm:$0xff]  ;;  %v2425_v40 = vpack.c.bf16 %v166_v30, %v165_v29  ;;  %v247_v2 = vld [vmem:[#allocation5 + $0x300] sm:$0xff] }
  0x61   :  { %2418 = vmatpush3.bf16.msra.mxu0 %v2417_v10  ;;  %v81_v37 = vsub.f32 %v79_v25, %v3097_v31  ;;  %v2457_v43 = vpack.c.bf16 %v198_v34, %v197_v32  ;;  %v2491_v45 = vpack.c.bf16 %v264_v39, %v263_v38  ;;  %vm104_vm0 = vcmp.eq.f32.partialorder %v3097_v31, 3.0  ;;  %v248_v3 = vld [vmem:[#allocation5 + $0x308] sm:$0xff]  ;;  %v265_v10 = vld [vmem:[#allocation5 + $0x390] sm:$0xff]  ;;  %v266_v11 = vld [vmem:[#allocation5 + $0x398] sm:$0xff] }
  0x62   :  { %2420 = vmatprep.subr.bf16.mxu0 %v2419_v14  ;;  %vm105_vm1 = vcmp.eq.f32.partialorder %v3097_v31, 4.0  ;;  %vm106_vm2 = vcmp.eq.f32.partialorder %v3097_v31, 5.0  ;;  %vm108_vm3 = vcmp.eq.f32.partialorder %v3097_v31, 7.0  ;;  %vm103_vm4 = vcmp.eq.f32.partialorder %v3097_v31, 2.0  ;;  %v216_v18 = vld [vmem:[#allocation5 + $0x208] sm:$0xff]  ;;  %v233_v20 = vld [vmem:[#allocation5 + $0x290] sm:$0xff] }
  0x63   :  { %2450 = vmatpush3.bf16.msra.mxu1 %v2449_v13  ;;  %v82_v41 = vmul.f32 %v81_v37, %v81_v37  ;;  %v84_v42 = vsub.f32 1.0, %v81_v37  ;;  %v89_v52 = vmul.f32 3.0, %v81_v37  ;;  %vm107_vm5 = vcmp.eq.f32.partialorder %v3097_v31, 6.0  ;;  %v215_v13 = vld [vmem:[#allocation5 + $0x200] sm:$0xff]  ;;  %v234_v21 = vld [vmem:[#allocation5 + $0x298] sm:$0xff]  ;;  %v268_v29 = vld [vmem:[#allocation5 + $0x3a8] sm:$0xff] }
  0x64   :  { %2452 = vmatprep.subr.bf16.mxu1 %v2451_v19  ;;  %vm101_vm6 = vcmp.eq.f32.partialorder %v3097_v31, 0.0  ;;  %vm102_vm7 = vcmp.eq.f32.partialorder %v3097_v31, 1.0  ;;  %v2493_v14 = vpack.c.bf16 %v248_v3, %v247_v2  ;;  %vm110_vm8 = vcmp.eq.f32.partialorder %v3097_v31, 9.0  ;;  %v217_v38 = vld [vmem:[#allocation5 + $0x210] sm:$0xff]  ;;  %v218_v39 = vld [vmem:[#allocation5 + $0x218] sm:$0xff]  ;;  %v272_v2 = vld [vmem:[#allocation5 + $0x3c8] sm:$0xff] }
  0x65   :  { %2422 = vmatpush3.bf16.msra.mxu0 %v2421_v26  ;;  %v83_v46 = vmul.f32 %v82_v41, %v81_v37  ;;  %v87_v47 = vmul.f32 3.0, %v82_v41  ;;  %v94_v48 = vmul.f32 -6.0, %v82_v41  ;;  %v98_v49 = vmul.f32 %v84_v42, %v84_v42  ;;  %v249_v26 = vld [vmem:[#allocation5 + $0x310] sm:$0xff]  ;;  %v235_v41 = vld [vmem:[#allocation5 + $0x2a0] sm:$0xff] }
  0x66   :  { %2424 = vmatprep.subr.bf16.mxu0 %v2423_v28  ;;  %vm109_vm9 = vcmp.eq.f32.partialorder %v3097_v31, 8.0  ;;  %v2495_v25 = vpack.c.bf16 %v266_v11, %v265_v10  ;;  %v267_v28 = vld [vmem:[#allocation5 + $0x3a0] sm:$0xff]  ;;  %v2461_v34 = vpack.c.bf16 %v216_v18, %v215_v13  ;;  %v2463_v35 = vpack.c.bf16 %v234_v21, %v233_v20  ;;  %v240_v13 = vld [vmem:[#allocation5 + $0x2c8] sm:$0xff]  ;;  %v274_v18 = vld [vmem:[#allocation5 + $0x3d8] sm:$0xff] }
  0x67   :  { %2454 = vmatpush3.bf16.msra.mxu1 %v2453_v27  ;;  %v2862_v50 = vpop.eup %2861  ;;  %v86_v51 = vmul.f32 -3.0, %v83_v46  ;;  %v93_v53 = vmul.f32 3.0, %v83_v46  ;;  %v99_v54 = vmul.f32 %v98_v49, %v84_v42  ;;  %v3119_v4 = vmul.f32 0.16666667, %v83_v46  ;;  %v250_v27 = vld [vmem:[#allocation5 + $0x318] sm:$0xff]  ;;  %v251_v46 = vld [vmem:[#allocation5 + $0x320] sm:$0xff] }
  0x68   :  { %2456 = vmatprep.subr.bf16.mxu1 %v2455_v33  ;;  %v147_v55 = vadd.f32 1.0, %v2862_v50  ;;  %v270_v49 = vld [vmem:[#allocation5 + $0x3b8] sm:$0xff]  ;;  %vm111_vm10 = vcmp.eq.f32.partialorder %v3097_v31, 10.0  ;;  %v2465_v50 = vpack.c.bf16 %v218_v39, %v217_v38  ;;  %v239_v11 = vld [vmem:[#allocation5 + $0x2c0] sm:$0xff]  ;;  %v244_v38 = vld [vmem:[#allocation5 + $0x2e8] sm:$0xff] }
  0x69   :  { %2426 = vmatpush3.bf16.msra.mxu0 %v2425_v40  ;;  %v88_v56 = vadd.f32 %v87_v47, %v86_v51  ;;  %v95_v57 = vadd.f32 %v94_v48, %v93_v53  ;;  %v3102_v58 = vmul.f32 0.16666667, %v99_v54  ;;  %v2497_v40 = vpack.c.bf16 %v250_v27, %v249_v26  ;;  %v252_v47 = vld [vmem:[#allocation5 + $0x328] sm:$0xff]  ;;  %v269_v48 = vld [vmem:[#allocation5 + $0x3b0] sm:$0xff]  ;;  %v219_v53 = vld [vmem:[#allocation5 + $0x220] sm:$0xff] }
  0x6a   :  { %2460 = vmatprep.subr.bf16.mxu0 %v2459_v44  ;;  %2863 = vrcp.f32 %v147_v55  ;;  %v236_v44 = vld [vmem:[#allocation5 + $0x2a8] sm:$0xff]  ;;  %v2501_v55 = vpack.c.bf16 %v252_v47, %v251_v46  ;;  %v2475_v20 = vpack.c.bf16 %v240_v13, %v239_v11  ;;  %v223_v21 = vld [vmem:[#allocation5 + $0x240] sm:$0xff]  ;;  %v257_v27 = vld [vmem:[#allocation5 + $0x350] sm:$0xff]  ;;  %v2999_v13 = vmov 0.0  }
  0x6b   :  { %2458 = vmatpush3.bf16.msra.mxu1 %v2457_v43  ;;  %v90_v59 = vadd.f32 %v89_v52, %v88_v56  ;;  %v96_v60 = vadd.f32 4.0, %v95_v57  ;;  %v112_v61 = vsel %vm104_vm0, %v3102_v58, 0.0  ;;  %v120_v62 = vsel %vm106_vm2, %v3102_v58, 0.0  ;;  %v220_v54 = vld [vmem:[#allocation5 + $0x228] sm:$0xff]  ;;  %v237_v56 = vld [vmem:[#allocation5 + $0x2b0] sm:$0xff]  ;;  %v227_v47 = vld [vmem:[#allocation5 + $0x260] sm:$0xff] }
  0x6c   :  { %2492 = vmatprep.subr.bf16.mxu1 %v2491_v45  ;;  %v116_v63 = vsel %vm105_vm1, %v3102_v58, 0.0  ;;  %v128_v5 = vsel %vm108_vm3, %v3102_v58, 0.0  ;;  %v136_v32 = vsel %vm110_vm8, %v3102_v58, 0.0  ;;  %v2499_v45 = vpack.c.bf16 %v268_v29, %v267_v28  ;;  %v258_v28 = vld [vmem:[#allocation5 + $0x358] sm:$0xff]  ;;  %v275_v29 = vld [vmem:[#allocation5 + $0x3e0] sm:$0xff]  ;;  %v284_v31 = vld [vmem:[#allocation5 + $0x428] sm:$0xff] }
  0x6d   :  { %v91_v0 = vadd.f32 1.0, %v90_v59  ;;  %v3116_v1 = vmul.f32 0.16666667, %v96_v60  ;;  %v140_v51 = vsel %vm111_vm10, %v3102_v58, 0.0  ;;  %v2467_v52 = vpack.c.bf16 %v236_v44, %v235_v41  ;;  %v238_v59 = vld [vmem:[#allocation5 + $0x2b8] sm:$0xff]  ;;  %v260_v41 = vld [vmem:[#allocation5 + $0x368] sm:$0xff] }
  0x6e   :  { %v2503_v60 = vpack.c.bf16 %v270_v49, %v269_v48  ;;  %v245_v49 = vld [vmem:[#allocation5 + $0x2f0] sm:$0xff]  ;;  %v282_v11 = vld [vmem:[#allocation5 + $0x418] sm:$0xff] }
  0x6f   :  { %v3126_v6 = vmul.f32 0.16666667, %v91_v0  ;;  %v113_v7 = vsel %vm103_vm4, %v3116_v1, %v112_v61  ;;  %v121_v8 = vsel %vm105_vm1, %v3116_v1, %v120_v62  ;;  %v117_v9 = vsel %vm104_vm0, %v3116_v1, %v116_v63  ;;  %v253_v61 = vld [vmem:[#allocation5 + $0x330] sm:$0xff]  ;;  %v254_v62 = vld [vmem:[#allocation5 + $0x338] sm:$0xff]  ;;  %v271_v0 = vld [vmem:[#allocation5 + $0x3c0] sm:$0xff] }
  0x70   :  { %v129_v15 = vsel %vm107_vm5, %v3116_v1, %v128_v5  ;;  %v137_v36 = vsel %vm109_vm9, %v3116_v1, %v136_v32  ;;  %v141_v57 = vsel %vm110_vm8, %v3116_v1, %v140_v51  ;;  %v2469_v5 = vpack.c.bf16 %v220_v54, %v219_v53  ;;  %v262_v53 = vld [vmem:[#allocation5 + $0x378] sm:$0xff] }
  0x71   :  { %v114_v16 = vsel %vm102_vm7, %v3126_v6, %v113_v7  ;;  %v122_v17 = vsel %vm104_vm0, %v3126_v6, %v121_v8  ;;  %v118_v19 = vsel %vm103_vm4, %v3126_v6, %v117_v9  ;;  %v130_v30 = vsel %vm106_vm2, %v3126_v6, %v129_v15  ;;  %v221_v8 = vld [vmem:[#allocation5 + $0x230] sm:$0xff]  ;;  %v222_v9 = vld [vmem:[#allocation5 + $0x238] sm:$0xff]  ;;  %v255_v15 = vld [vmem:[#allocation5 + $0x340] sm:$0xff] }
  0x72   :  { %v115_v22 = vsel %vm101_vm6, %v3119_v4, %v114_v16  ;;  %v123_v23 = vsel %vm103_vm4, %v3119_v4, %v122_v17  ;;  %v119_v24 = vsel %vm102_vm7, %v3119_v4, %v118_v19  ;;  %v131_v42 = vsel %vm105_vm1, %v3119_v4, %v130_v30  ;;  %v256_v16 = vld [vmem:[#allocation5 + $0x348] sm:$0xff]  ;;  %v273_v17 = vld [vmem:[#allocation5 + $0x3d0] sm:$0xff] }
  0x73   :  { %366 = vmatprep.mubr.f32.mxu0 %v115_v22  ;;  %436 = vmatprep.mubr.f32.mxu1 %v123_v23  ;;  %v138_v43 = vsel %vm108_vm3, %v3126_v6, %v137_v36  ;;  %v142_v63 = vsel %vm109_vm9, %v3126_v6, %v141_v57  ;;  %v2471_v7 = vpack.c.bf16 %v238_v59, %v237_v56  ;;  %v224_v22 = vld [vmem:[#allocation5 + $0x248] sm:$0xff]  ;;  %v124_v54 = vsel %vm107_vm5, %v3102_v58, 0.0  ;;  %v229_v59 = vld [vmem:[#allocation5 + $0x270] sm:$0xff] }
  0x74   :  { %v2864_v33 = vpop.eup %2863  ;;  %437 = vmatmul.mubr.f32.vlgmr.msra.gmra.mrb[0].mxu1 %v119_v24  ;;  %v3190_v3 = vsel %vm108_vm3, %v3119_v4, %v142_v63  ;;  %v2505_v10 = vpack.c.bf16 %v254_v62, %v253_v61  ;;  %v2473_v19 = vpack.c.bf16 %v222_v9, %v221_v8  ;;  %v2509_v23 = vpack.c.bf16 %v256_v16, %v255_v15  ;;  %v241_v24 = vld [vmem:[#allocation5 + $0x2d0] sm:$0xff]  ;;  %v276_v30 = vld [vmem:[#allocation5 + $0x3e8] sm:$0xff]  ;;  %v286_v16 = vld [vmem:[#allocation5 + $0x438] sm:$0xff] }
  0x75   :  { %v150_v37 = vmul.f32 %v2864_v33, %v3093_v12  ;;  %2494 = vmatpush3.bf16.msra.mxu1 %v2493_v14  ;;  %v139_v12 = vsel %vm107_vm5, %v3119_v4, %v138_v43  ;;  %v2507_v14 = vpack.c.bf16 %v272_v2, %v271_v0  ;;  %v2511_v26 = vpack.c.bf16 %v274_v18, %v273_v17  ;;  %v278_v43 = vld [vmem:[#allocation5 + $0x3f8] sm:$0xff]  ;;  %v279_v2 = vld [vmem:[#allocation5 + $0x400] sm:$0xff]  ;;  %v285_v15 = vld [vmem:[#allocation5 + $0x430] sm:$0xff] }
  0x76   :  { %2496 = vmatprep.subr.bf16.mxu1 %v2495_v25  ;;  %576 = vmatprep.mubr.f32.mxu1 %v139_v12  ;;  %v242_v25 = vld [vmem:[#allocation5 + $0x2d8] sm:$0xff]  ;;  %v2477_v32 = vpack.c.bf16 %v224_v22, %v223_v21  ;;  %v2513_v36 = vpack.c.bf16 %v258_v28, %v257_v27  ;;  %v2515_v39 = vpack.c.bf16 %v276_v30, %v275_v29  ;;  %v228_v12 = vld [vmem:[#allocation5 + $0x268] sm:$0xff]  ;;  %v2997_v9 = vmov 0.0|0.0   ;;  %v287_v18 = vld [vmem:[#allocation5 + $0x440] sm:$0xff] }
  0x77   :  { %367 = vmatmul.mubr.f32.vlgmr.msra.gmra.mrb[0].mxu0 %v150_v37  ;;  %v2479_v33 = vpack.c.bf16 %v242_v25, %v241_v24  ;;  %v243_v37 = vld [vmem:[#allocation5 + $0x2e0] sm:$0xff]  ;;  %v2485_v56 = vpack.c.bf16 %v228_v12, %v227_v47  ;;  %v125_v62 = vsel %vm106_vm2, %v3116_v1, %v124_v54  ;;  %v2533_v17 = vpack.c.bf16 %v286_v16, %v285_v15  ;;  %v289_v21 = vld [vmem:[#allocation5 + $0x450] sm:$0xff]  ;;  %v290_v22 = vld [vmem:[#allocation5 + $0x458] sm:$0xff] }
  0x78   :  { %2462 = vmatpush3.bf16.msra.mxu0 %v2461_v34  ;;  %506 = vmatprep.mubr.f32.mxu0 %v131_v42  ;;  %v225_v34 = vld [vmem:[#allocation5 + $0x250] sm:$0xff]  ;;  %v2483_v46 = vpack.c.bf16 %v244_v38, %v243_v37  ;;  %v126_v0 = vsel %vm105_vm1, %v3126_v6, %v125_v62  ;;  %v291_v24 = vld [vmem:[#allocation5 + $0x460] sm:$0xff]  ;;  %v292_v25 = vld [vmem:[#allocation5 + $0x468] sm:$0xff] }
  0x79   :  { %2464 = vmatprep.subr.bf16.mxu0 %v2463_v35  ;;  %2498 = vmatpush3.bf16.msra.mxu1 %v2497_v40  ;;  %v226_v35 = vld [vmem:[#allocation5 + $0x258] sm:$0xff]  ;;  %v259_v40 = vld [vmem:[#allocation5 + $0x360] sm:$0xff]  ;;  %v277_v42 = vld [vmem:[#allocation5 + $0x3f0] sm:$0xff] }
  0x7a   :  { %2500 = vmatprep.subr.bf16.mxu1 %v2499_v45  ;;  %v2481_v44 = vpack.c.bf16 %v226_v35, %v225_v34  ;;  %v132_v45 = vsel %vm109_vm9, %v3102_v58, 0.0  ;;  %v2517_v48 = vpack.c.bf16 %v260_v41, %v259_v40  ;;  %v2519_v51 = vpack.c.bf16 %v278_v43, %v277_v42  ;;  %v293_v27 = vld [vmem:[#allocation5 + $0x470] sm:$0xff]  ;;  %v294_v28 = vld [vmem:[#allocation5 + $0x478] sm:$0xff]  ;;  %v773_v30 = vld [vmem:[#allocation7 + $0x180] sm:$0xff] }
  0x7b   :  { %v2545_v29 = vpack.c.bf16 %v294_v28, %v293_v27  ;;  %v758_v35 = vld [vmem:[#allocation7 + $0x108] sm:$0xff]  ;;  %v725_v40 = vld [vmem:[#allocation7] sm:$0xff]  ;;  %v775_v42 = vld [vmem:[#allocation7 + $0x190] sm:$0xff] }
  0x7c   :  { %2466 = vmatpush3.bf16.msra.mxu0 %v2465_v50  ;;  %v246_v50 = vld [vmem:[#allocation5 + $0x2f8] sm:$0xff]  ;;  %v742_v37 = vld [vmem:[#allocation7 + $0x88] sm:$0xff]  ;;  %v743_v12 = vld [vmem:[#allocation7 + $0x90] sm:$0xff] }
  0x7d   :  { %2468 = vmatprep.subr.bf16.mxu0 %v2467_v52  ;;  %2502 = vmatpush3.bf16.msra.mxu1 %v2501_v55  ;;  %v261_v52 = vld [vmem:[#allocation5 + $0x370] sm:$0xff]  ;;  %v133_v55 = vsel %vm108_vm3, %v3116_v1, %v132_v45  ;;  %v2487_v57 = vpack.c.bf16 %v246_v50, %v245_v49  ;;  %v127_v1 = vsel %vm104_vm0, %v3119_v4, %v126_v0  ;;  %v726_v41 = vld [vmem:[#allocation7 + $0x8] sm:$0xff]  ;;  %v781_v15 = vld [vmem:[#allocation7 + $0x1c0] sm:$0xff] }
  0x7e   :  { %2504 = vmatprep.subr.bf16.mxu1 %v2503_v60  ;;  %v230_v60 = vld [vmem:[#allocation5 + $0x278] sm:$0xff]  ;;  %v2521_v61 = vpack.c.bf16 %v262_v53, %v261_v52  ;;  %v134_v58 = vsel %vm107_vm5, %v3126_v6, %v133_v55  ;;  %v2549_v43 = vpack.c.bf16 %v726_v41, %v725_v40  ;;  %v727_v50 = vld [vmem:[#allocation7 + $0x10] sm:$0xff]  ;;  %v777_v52 = vld [vmem:[#allocation7 + $0x1a0] sm:$0xff] }
  0x7f   :  { %v2489_v63 = vpack.c.bf16 %v230_v60, %v229_v59  ;;  %v778_v54 = vld [vmem:[#allocation7 + $0x1a8] sm:$0xff]  ;;  %v761_v55 = vld [vmem:[#allocation7 + $0x120] sm:$0xff]  ;;  %v779_v0 = vld [vmem:[#allocation7 + $0x1b0] sm:$0xff] }
  0x80   :  { %2470 = vmatpush3.bf16.msra.mxu0 %v2469_v5  ;;  %v280_v5 = vld [vmem:[#allocation5 + $0x408] sm:$0xff]  ;;  %v745_v60 = vld [vmem:[#allocation7 + $0xa0] sm:$0xff]  ;;  %v783_v27 = vld [vmem:[#allocation7 + $0x1d0] sm:$0xff] }
  0x81   :  { %2472 = vmatprep.subr.bf16.mxu0 %v2471_v7  ;;  %2506 = vmatpush3.bf16.msra.mxu1 %v2505_v10  ;;  %v135_v7 = vsel %vm106_vm2, %v3119_v4, %v134_v58  ;;  %v2524_v8 = vpack.c.bf16 %v280_v5, %v279_v2  ;;  %v281_v10 = vld [vmem:[#allocation5 + $0x410] sm:$0xff]  ;;  %v729_v58 = vld [vmem:[#allocation7 + $0x20] sm:$0xff]  ;;  %v780_v5 = vld [vmem:[#allocation7 + $0x1b8] sm:$0xff] }
  0x82   :  { %2508 = vmatprep.subr.bf16.mxu1 %v2507_v14  ;;  %v2527_v6 = vpack.c.bf16 %v282_v11, %v281_v10  ;;  %v283_v14 = vld [vmem:[#allocation5 + $0x420] sm:$0xff]  ;;  %v747_v11 = vld [vmem:[#allocation7 + $0xb0] sm:$0xff] }
  0x83   :  { %v2530_v4 = vpack.c.bf16 %v284_v31, %v283_v14  ;;  %v731_v31 = vld [vmem:[#allocation7 + $0x30] sm:$0xff]  ;;  %v785_v40 = vld [vmem:[#allocation7 + $0x1e0] sm:$0xff] }
  0x84   :  { %2474 = vmatpush3.bf16.msra.mxu0 %v2473_v19  ;;  %v288_v19 = vld [vmem:[#allocation5 + $0x448] sm:$0xff] }
  0x85   :  { %2476 = vmatprep.subr.bf16.mxu0 %v2475_v20  ;;  %2510 = vmatpush3.bf16.msra.mxu1 %v2509_v23  ;;  %v2536_v20 = vpack.c.bf16 %v288_v19, %v287_v18  ;;  %v2539_v23 = vpack.c.bf16 %v290_v22, %v289_v21  ;;  %v765_v18 = vld [vmem:[#allocation7 + $0x140] sm:$0xff]  ;;  %v766_v19 = vld [vmem:[#allocation7 + $0x148] sm:$0xff] }
  0x86   :  { %2512 = vmatprep.subr.bf16.mxu1 %v2511_v26  ;;  %v2542_v26 = vpack.c.bf16 %v292_v25, %v291_v24  ;;  %v2597_v21 = vpack.c.bf16 %v766_v19, %v765_v18  ;;  %v749_v22 = vld [vmem:[#allocation7 + $0xc0] sm:$0xff] }
  0x87   :  { %v733_v25 = vld [vmem:[#allocation7 + $0x40] sm:$0xff] }
  0x88   :  { %2478 = vmatpush3.bf16.msra.mxu0 %v2477_v32  ;;  %v774_v32 = vld [vmem:[#allocation7 + $0x188] sm:$0xff] }
  0x89   :  { %2480 = vmatprep.subr.bf16.mxu0 %v2479_v33  ;;  %2514 = vmatpush3.bf16.msra.mxu1 %v2513_v36  ;;  %v757_v33 = vld [vmem:[#allocation7 + $0x100] sm:$0xff]  ;;  %v2579_v34 = vpack.c.bf16 %v774_v32, %v773_v30  ;;  %v767_v30 = vld [vmem:[#allocation7 + $0x150] sm:$0xff]  ;;  %v768_v32 = vld [vmem:[#allocation7 + $0x158] sm:$0xff] }
  0x8a   :  { %2516 = vmatprep.subr.bf16.mxu1 %v2515_v39  ;;  %v741_v36 = vld [vmem:[#allocation7 + $0x80] sm:$0xff]  ;;  %v2581_v38 = vpack.c.bf16 %v758_v35, %v757_v33  ;;  %v751_v35 = vld [vmem:[#allocation7 + $0xd0] sm:$0xff] }
  0x8b   :  { %v2547_v39 = vpack.c.bf16 %v742_v37, %v741_v36  ;;  %v752_v36 = vld [vmem:[#allocation7 + $0xd8] sm:$0xff] }
  0x8c   :  { %2482 = vmatpush3.bf16.msra.mxu0 %v2481_v44  ;;  %v776_v44 = vld [vmem:[#allocation7 + $0x198] sm:$0xff]  ;;  %v2567_v37 = vpack.c.bf16 %v752_v36, %v751_v35 }
  0x8d   :  { %2484 = vmatprep.subr.bf16.mxu0 %v2483_v46  ;;  %2518 = vmatpush3.bf16.msra.mxu1 %v2517_v48  ;;  %v2583_v45 = vpack.c.bf16 %v776_v44, %v775_v42  ;;  %v760_v46 = vld [vmem:[#allocation7 + $0x118] sm:$0xff]  ;;  %v786_v42 = vld [vmem:[#allocation7 + $0x1e8] sm:$0xff] }
  0x8e   :  { %2520 = vmatprep.subr.bf16.mxu1 %v2519_v51  ;;  %v744_v48 = vld [vmem:[#allocation7 + $0x98] sm:$0xff]  ;;  %v770_v44 = vld [vmem:[#allocation7 + $0x168] sm:$0xff] }
  0x8f   :  { %v2551_v49 = vpack.c.bf16 %v744_v48, %v743_v12  ;;  %v728_v51 = vld [vmem:[#allocation7 + $0x18] sm:$0xff]  ;;  %v737_v48 = vld [vmem:[#allocation7 + $0x60] sm:$0xff] }
  0x90   :  { %2486 = vmatpush3.bf16.msra.mxu0 %v2485_v56  ;;  %v2553_v53 = vpack.c.bf16 %v728_v51, %v727_v50  ;;  %v762_v56 = vld [vmem:[#allocation7 + $0x128] sm:$0xff]  ;;  %v787_v50 = vld [vmem:[#allocation7 + $0x1f0] sm:$0xff] }
  0x91   :  { %2488 = vmatprep.subr.bf16.mxu0 %v2487_v57  ;;  %2522 = vmatpush3.bf16.msra.mxu1 %v2521_v61  ;;  %v2587_v57 = vpack.c.bf16 %v778_v54, %v777_v52  ;;  %v2589_v59 = vpack.c.bf16 %v762_v56, %v761_v55  ;;  %v746_v61 = vld [vmem:[#allocation7 + $0xa8] sm:$0xff]  ;;  %v788_v52 = vld [vmem:[#allocation7 + $0x1f8] sm:$0xff] }
  0x92   :  { %2548 = vmatprep.subr.bf16.mxu1 %v2547_v39  ;;  %v2555_v62 = vpack.c.bf16 %v746_v61, %v745_v60  ;;  %v736_v39 = vld [vmem:[#allocation7 + $0x58] sm:$0xff]  ;;  %v2607_v55 = vpack.c.bf16 %v788_v52, %v787_v50  ;;  %v739_v61 = vld [vmem:[#allocation7 + $0x70] sm:$0xff] }
  0x93   :  { %v772_v54 = vld [vmem:[#allocation7 + $0x178] sm:$0xff] }
  0x94   :  { %2490 = vmatpush3.bf16.msra.mxu0 %v2489_v63  ;;  %577 = vmatmul.mubr.f32.vlgmr.msra.gmra.mrb[2].mxu1 %v135_v7  ;;  %v730_v63 = vld [vmem:[#allocation7 + $0x28] sm:$0xff]  ;;  %v763_v7 = vld [vmem:[#allocation7 + $0x130] sm:$0xff] }
  0x95   :  { %2523 = vmatprep.subr.bf16.mxu0 %v2997_v9  ;;  %2550 = vmatpush3.bf16.msra.mxu1 %v2549_v43  ;;  %v2557_v2 = vpack.c.bf16 %v730_v63, %v729_v58  ;;  %v769_v43 = vld [vmem:[#allocation7 + $0x160] sm:$0xff] }
  0x96   :  { %2552 = vmatprep.subr.bf16.mxu1 %v2551_v49  ;;  %v738_v49 = vld [vmem:[#allocation7 + $0x68] sm:$0xff]  ;;  %v837_v63 = vld [vmem:[#allocation7 + $0x380] sm:$0xff] }
  0x97   :  { %507 = vmatmul.mubr.f32.vlgmr.msra.gmra.mrb[2].mxu0 %v127_v1  ;;  %v764_v1 = vld [vmem:[#allocation7 + $0x138] sm:$0xff]  ;;  %v2573_v51 = vpack.c.bf16 %v738_v49, %v737_v48 }
  0x98   :  { %2525 = vmatpush3.bf16.msra.mxu0 %v2524_v8  ;;  %2322 = vmatprep.mubr.msk.f32.mxu0 %vm2998_vm11, %v2999_v13  ;;  %v2591_v8 = vpack.c.bf16 %v780_v5, %v779_v0  ;;  %v2593_v10 = vpack.c.bf16 %v764_v1, %v763_v7  ;;  %v838_v0 = vld [vmem:[#allocation7 + $0x388] sm:$0xff]  ;;  %v805_v5 = vld [vmem:[#allocation7 + $0x280] sm:$0xff] }
  0x99   :  { %2526 = vmatprep.subr.bf16.mxu0 %v2997_v9  ;;  %2554 = vmatpush3.bf16.msra.mxu1 %v2553_v53  ;;  %v771_v53 = vld [vmem:[#allocation7 + $0x170] sm:$0xff]  ;;  %v806_v7 = vld [vmem:[#allocation7 + $0x288] sm:$0xff] }
  0x9a   :  { %2556 = vmatprep.subr.bf16.mxu1 %v2555_v62  ;;  %v2609_v56 = vpack.c.bf16 %v772_v54, %v771_v53  ;;  %v740_v62 = vld [vmem:[#allocation7 + $0x78] sm:$0xff]  ;;  %v2611_v1 = vpack.c.bf16 %v806_v7, %v805_v5 }
  0x9b   :  { %v2577_v58 = vpack.c.bf16 %v740_v62, %v739_v61 }
  0x9c   :  { %2528 = vmatpush3.bf16.msra.mxu0 %v2527_v6  ;;  %v748_v6 = vld [vmem:[#allocation7 + $0xb8] sm:$0xff] }
  0x9d   :  { %2529 = vmatprep.subr.bf16.mxu0 %v2997_v9  ;;  %2558 = vmatpush3.bf16.msra.mxu1 %v2557_v2  ;;  %v2559_v14 = vpack.c.bf16 %v748_v6, %v747_v11  ;;  %v2643_v2 = vpack.c.bf16 %v838_v0, %v837_v63  ;;  %v839_v0 = vld [vmem:[#allocation7 + $0x390] sm:$0xff] }
  0x9f   :  { %2560 = vmatprep.subr.bf16.mxu1 %v2559_v14  ;;  %v1813_v14 = vld [vmem:[%s3519_s2] ss:$0 sm:$0xff] }
  0xa0   :  { %2531 = vmatpush3.bf16.msra.mxu0 %v2530_v4  ;;  %v732_v4 = vld [vmem:[#allocation7 + $0x38] sm:$0xff] }
  0xa1   :  { %2532 = vmatprep.subr.bf16.mxu0 %v2997_v9  ;;  %v2561_v16 = vpack.c.bf16 %v732_v4, %v731_v31 }
  0xa3   :  { %2562 = vmatpush3.bf16.msra.mxu1 %v2561_v16 }
  0xa4   :  { %2534 = vmatpush3.bf16.msra.mxu0 %v2533_v17  ;;  %v782_v17 = vld [vmem:[#allocation7 + $0x1c8] sm:$0xff] }
  0xa5   :  { %2535 = vmatprep.subr.bf16.mxu0 %v2997_v9 }
  0xa8   :  { %2537 = vmatpush3.bf16.msra.mxu0 %v2536_v20  ;;  %v2595_v20 = vpack.c.bf16 %v782_v17, %v781_v15 }
  0xa9   :  { %2538 = vmatprep.subr.bf16.mxu0 %v2997_v9 }
  0xac   :  { %2540 = vmatpush3.bf16.msra.mxu0 %v2539_v23  ;;  %v750_v23 = vld [vmem:[#allocation7 + $0xc8] sm:$0xff] }
  0xad   :  { %2541 = vmatprep.subr.bf16.mxu0 %v2997_v9  ;;  %v2563_v24 = vpack.c.bf16 %v750_v23, %v749_v22 }
  0xaf   :  { %2564 = vmatprep.subr.bf16.mxu1 %v2563_v24 }
  0xb0   :  { %2543 = vmatpush3.bf16.msra.mxu0 %v2542_v26  ;;  %v734_v26 = vld [vmem:[#allocation7 + $0x48] sm:$0xff] }
  0xb1   :  { %2544 = vmatprep.subr.bf16.mxu0 %v2997_v9  ;;  %v2565_v28 = vpack.c.bf16 %v734_v26, %v733_v25 }
  0xb3   :  { %2566 = vmatpush3.bf16.msra.mxu1 %v2565_v28 }
  0xb4   :  { %2546 = vmatpush3.bf16.msra.mxu0 %v2545_v29  ;;  %v784_v29 = vld [vmem:[#allocation7 + $0x1d8] sm:$0xff]  ;;  %2568 = vmatprep.subr.bf16.mxu1 %v2567_v37 }
  0xb5   :  { %2580 = vmatprep.subr.bf16.mxu0 %v2579_v34  ;;  %v2599_v33 = vpack.c.bf16 %v784_v29, %v783_v27  ;;  %v2601_v34 = vpack.c.bf16 %v768_v32, %v767_v30 }
  0xb7   :  { %2323 = vmatmul.mubr.f32.vlgmr.msra.gmra.mrb[4].mxu0 %v3190_v3  ;;  %v759_v3 = vld [vmem:[#allocation7 + $0x110] sm:$0xff] }
  0xb8   :  { %2582 = vmatpush3.bf16.msra.mxu0 %v2581_v38  ;;  %v2585_v47 = vpack.c.bf16 %v760_v46, %v759_v3  ;;  %v735_v38 = vld [vmem:[#allocation7 + $0x50] sm:$0xff]  ;;  %v2605_v3 = vpack.c.bf16 %v770_v44, %v769_v43  ;;  %v753_v46 = vld [vmem:[#allocation7 + $0xe0] sm:$0xff] }
  0xb9   :  { %2584 = vmatprep.subr.bf16.mxu0 %v2583_v45  ;;  %v2569_v41 = vpack.c.bf16 %v736_v39, %v735_v38  ;;  %v2603_v45 = vpack.c.bf16 %v786_v42, %v785_v40  ;;  %v3237_v38 = vld [vmem:[#allocation7 + $0x300] sm:$0xff]  ;;  %v3239_v39 = vld [vmem:[#allocation7 + $0x308] sm:$0xff] }
  0xbb   :  { %2570 = vmatpush3.bf16.msra.mxu1 %v2569_v41 }
  0xbc   :  { %2586 = vmatpush3.bf16.msra.mxu0 %v2585_v47  ;;  %v754_v47 = vld [vmem:[#allocation7 + $0xe8] sm:$0xff] }
  0xbd   :  { %2588 = vmatprep.subr.bf16.mxu0 %v2587_v57  ;;  %v2571_v12 = vpack.c.bf16 %v754_v47, %v753_v46  ;;  %v755_v57 = vld [vmem:[#allocation7 + $0xf0] sm:$0xff]  ;;  %v2645_v46 = vpack.c.bf16 %v3239_v39, %v3237_v38 }
  0xbf   :  { %2572 = vmatprep.subr.bf16.mxu1 %v2571_v12 }
  0xc0   :  { %2590 = vmatpush3.bf16.msra.mxu0 %v2589_v59  ;;  %2574 = vmatpush3.bf16.msra.mxu1 %v2573_v51  ;;  %v756_v59 = vld [vmem:[#allocation7 + $0xf8] sm:$0xff] }
  0xc1   :  { %2592 = vmatprep.subr.bf16.mxu0 %v2591_v8  ;;  %v2575_v60 = vpack.c.bf16 %v756_v59, %v755_v57 }
  0xc3   :  { %2576 = vmatprep.subr.bf16.mxu1 %v2575_v60 }
  0xc4   :  { %2594 = vmatpush3.bf16.msra.mxu0 %v2593_v10  ;;  %2578 = vmatpush3.bf16.msra.mxu1 %v2577_v58 }
  0xc5   :  { %2596 = vmatprep.subr.bf16.mxu0 %v2595_v20  ;;  %2612 = vmatprep.subr.bf16.mxu1 %v2611_v1  ;;  %v789_v1 = vld [vmem:[#allocation7 + $0x200] sm:$0xff] }
  0xc8   :  { %2598 = vmatpush3.bf16.msra.mxu0 %v2597_v21 }
  0xc9   :  { %2600 = vmatprep.subr.bf16.mxu0 %v2599_v33 }
  0xcc   :  { %2602 = vmatpush3.bf16.msra.mxu0 %v2601_v34 }
  0xcd   :  { %2604 = vmatprep.subr.bf16.mxu0 %v2603_v45 }
  0xd0   :  { %2606 = vmatpush3.bf16.msra.mxu0 %v2605_v3 }
  0xd1   :  { %2608 = vmatprep.subr.bf16.mxu0 %v2607_v55 }
  0xd4   :  { %2610 = vmatpush3.bf16.msra.mxu0 %v2609_v56 }
  0xd5   :  { %2644 = vmatprep.subr.bf16.mxu0 %v2643_v2  ;;  %v840_v2 = vld [vmem:[#allocation7 + $0x398] sm:$0xff] }
 0x147   :  { %v1886_v8 = vpop.f32.mrb[0].mxu1 }
 0x148   :  { %v1887_v10 = vpop.f32.mrb[1].mxu1 }
 0x149   :  { %v1888_v11 = vadd.f32 %v1887_v10, %v1886_v8  ;;  %v790_v8 = vld [vmem:[#allocation7 + $0x208] sm:$0xff] }
 0x14a   :  { %v1851_v6 = vpop.f32.mrb[0].mxu0 }
 0x14b   :  { %v1852_v31 = vpop.f32.mrb[1].mxu0 }
 0x14c   :  { %v1853_v4 = vadd.f32 %v1852_v31, %v1851_v6 }
 0x14e   :  { %v369_v15 = vadd.f32 %v1853_v4, %v1813_v14  ;;  %v823_v4 = vld [vmem:[#allocation7 + $0x310] sm:$0xff] }
 0x150   :  { %v439_v16 = vadd.f32 %v1888_v11, %v369_v15  ;;  %v824_v15 = vld [vmem:[#allocation7 + $0x318] sm:$0xff] }
 0x167   :  { %v1956_v17 = vpop.f32.mrb[2].mxu1 }
 0x168   :  { %v1957_v18 = vpop.f32.mrb[3].mxu1 }
 0x169   :  { %v1958_v19 = vadd.f32 %v1957_v18, %v1956_v17 }
 0x16a   :  { %v1921_v20 = vpop.f32.mrb[2].mxu0 }
 0x16b   :  { %v1922_v21 = vpop.f32.mrb[3].mxu0 }
 0x16c   :  { %v1923_v22 = vadd.f32 %v1922_v21, %v1921_v20  ;;  %v807_v20 = vld [vmem:[#allocation7 + $0x290] sm:$0xff]  ;;  %v808_v21 = vld [vmem:[#allocation7 + $0x298] sm:$0xff] }
 0x16e   :  { %v509_v23 = vadd.f32 %v1923_v22, %v439_v16  ;;  %v2613_v22 = vpack.c.bf16 %v790_v8, %v789_v1  ;;  %v813_v1 = vld [vmem:[#allocation7 + $0x2c0] sm:$0xff]  ;;  %v814_v8 = vld [vmem:[#allocation7 + $0x2c8] sm:$0xff] }
 0x170   :  { %v579_v24 = vadd.f32 %v1958_v19, %v509_v23  ;;  %v2647_v19 = vpack.c.bf16 %v840_v2, %v839_v0  ;;  %v841_v23 = vld [vmem:[#allocation7 + $0x3a0] sm:$0xff] }
 0x171   :  { %v829_v0 = vld [vmem:[#allocation7 + $0x340] sm:$0xff] }
 0x18a   :  { %v648_v25 = vpop.f32.mrb[4].mxu0 }
 0x18b   :  { %v3230_v26 = vadd.f32 %v648_v25, %v579_v24  ;;  %v2324_v27 = vpop.f32.mrb[5].mxu0  ;;  %v842_v24 = vld [vmem:[#allocation7 + $0x3a8] sm:$0xff] }
 0x18c   :  { %v2651_v39 = vpack.c.bf16 %v842_v24, %v841_v23 }
 0x18d   :  { %v1814_v28 = vadd.f32 2.2, %v3230_v26  ;;  %v1815_v29 = vmul.f32 -1.442695, %v3230_v26 }
 0x18f   :  { %v653_v30 = vmul.f32 2.5, %v1814_v28  ;;  %2865 = vpow2.f32 %v1815_v29  ;;  %v2649_v29 = vpack.c.bf16 %v824_v15, %v823_v4  ;;  %v797_v4 = vld [vmem:[#allocation7 + $0x240] sm:$0xff]  ;;  %v798_v15 = vld [vmem:[#allocation7 + $0x248] sm:$0xff] }
 0x190   :  { %v2629_v23 = vpack.c.bf16 %v798_v15, %v797_v4  ;;  %v864_v4 = vld [vmem:[#allocation7 + $0x458] sm:$0xff] }
 0x191   :  { %v3234_v32 = vfloor.f32 %v653_v30 }
 0x193   :  { %v655_v33 = vsub.f32 %v653_v30, %v3234_v32  ;;  %vm675_vm12 = vcmp.eq.f32.partialorder %v3234_v32, 0.0  ;;  %vm677_vm13 = vcmp.eq.f32.partialorder %v3234_v32, 2.0  ;;  %vm678_vm14 = vcmp.eq.f32.partialorder %v3234_v32, 3.0 }
 0x194   :  { %vm679_vm15 = vcmp.eq.f32.partialorder %v3234_v32, 4.0  ;;  %vm680_vm0 = vcmp.eq.f32.partialorder %v3234_v32, 5.0  ;;  %vm681_vm1 = vcmp.eq.f32.partialorder %v3234_v32, 6.0  ;;  %vm682_vm2 = vcmp.eq.f32.partialorder %v3234_v32, 7.0 }
 0x195   :  { %v656_v34 = vmul.f32 %v655_v33, %v655_v33  ;;  %v658_v35 = vsub.f32 1.0, %v655_v33  ;;  %v663_v12 = vmul.f32 3.0, %v655_v33  ;;  %vm683_vm3 = vcmp.eq.f32.partialorder %v3234_v32, 8.0 }
 0x196   :  { %vm684_vm4 = vcmp.eq.f32.partialorder %v3234_v32, 9.0  ;;  %vm685_vm5 = vcmp.eq.f32.partialorder %v3234_v32, 10.0  ;;  %vm676_vm6 = vcmp.eq.f32.partialorder %v3234_v32, 1.0  ;;  %v861_v32 = vld [vmem:[#allocation7 + $0x440] sm:$0xff] }
 0x197   :  { %v657_v36 = vmul.f32 %v656_v34, %v655_v33  ;;  %v672_v37 = vmul.f32 %v658_v35, %v658_v35  ;;  %v661_v40 = vmul.f32 3.0, %v656_v34  ;;  %v668_v44 = vmul.f32 -6.0, %v656_v34 }
 0x198   :  { %v2615_v34 = vpack.c.bf16 %v808_v21, %v807_v20  ;;  %v816_v20 = vld [vmem:[#allocation7 + $0x2d8] sm:$0xff]  ;;  %v849_v21 = vld [vmem:[#allocation7 + $0x3e0] sm:$0xff] }
 0x199   :  { %v2866_v41 = vpop.eup %2865  ;;  %v660_v42 = vmul.f32 -3.0, %v657_v36  ;;  %v667_v43 = vmul.f32 3.0, %v657_v36  ;;  %v673_v45 = vmul.f32 %v672_v37, %v658_v35  ;;  %v3284_v5 = vmul.f32 0.16666667, %v657_v36  ;;  %v791_v35 = vld [vmem:[#allocation7 + $0x210] sm:$0xff]  ;;  %v792_v36 = vld [vmem:[#allocation7 + $0x218] sm:$0xff] }
 0x19a   :  { %v721_v3 = vadd.f32 1.0, %v2866_v41  ;;  %v825_v37 = vld [vmem:[#allocation7 + $0x320] sm:$0xff] }
 0x19b   :  { %v662_v47 = vadd.f32 %v661_v40, %v660_v42  ;;  %v669_v48 = vadd.f32 %v668_v44, %v667_v43  ;;  %v3243_v49 = vmul.f32 0.16666667, %v673_v45  ;;  %v826_v40 = vld [vmem:[#allocation7 + $0x328] sm:$0xff]  ;;  %v809_v41 = vld [vmem:[#allocation7 + $0x2a0] sm:$0xff]  ;;  %v843_v44 = vld [vmem:[#allocation7 + $0x3b0] sm:$0xff] }
 0x19c   :  { %2867 = vrcp.f32 %v721_v3  ;;  %v810_v42 = vld [vmem:[#allocation7 + $0x2a8] sm:$0xff]  ;;  %v844_v45 = vld [vmem:[#allocation7 + $0x3b8] sm:$0xff]  ;;  %v2617_v3 = vpack.c.bf16 %v792_v36, %v791_v35  ;;  %v851_v36 = vld [vmem:[#allocation7 + $0x3f0] sm:$0xff] }
 0x19d   :  { %v664_v50 = vadd.f32 %v663_v12, %v662_v47  ;;  %v670_v51 = vadd.f32 4.0, %v669_v48  ;;  %v686_v54 = vsel %vm678_vm14, %v3243_v49, 0.0  ;;  %v714_v55 = vsel %vm685_vm5, %v3243_v49, 0.0  ;;  %v793_v12 = vld [vmem:[#allocation7 + $0x220] sm:$0xff]  ;;  %v794_v48 = vld [vmem:[#allocation7 + $0x228] sm:$0xff] }
 0x19e   :  { %v694_v56 = vsel %vm680_vm0, %v3243_v49, 0.0  ;;  %v690_v57 = vsel %vm679_vm15, %v3243_v49, 0.0  ;;  %v710_v59 = vsel %vm684_vm4, %v3243_v49, 0.0  ;;  %v702_v60 = vsel %vm682_vm2, %v3243_v49, 0.0  ;;  %v818_v35 = vld [vmem:[#allocation7 + $0x2e8] sm:$0xff] }
 0x19f   :  { %v665_v52 = vadd.f32 1.0, %v664_v50  ;;  %v3255_v53 = vmul.f32 0.16666667, %v670_v51  ;;  %v2619_v47 = vpack.c.bf16 %v810_v42, %v809_v41  ;;  %v827_v50 = vld [vmem:[#allocation7 + $0x330] sm:$0xff]  ;;  %v2655_v51 = vpack.c.bf16 %v844_v45, %v843_v44  ;;  %v801_v41 = vld [vmem:[#allocation7 + $0x260] sm:$0xff]  ;;  %v802_v42 = vld [vmem:[#allocation7 + $0x268] sm:$0xff] }
 0x1a0   :  { %v836_v45 = vld [vmem:[#allocation7 + $0x378] sm:$0xff] }
 0x1a1   :  { %v3273_v61 = vmul.f32 0.16666667, %v665_v52  ;;  %v687_v62 = vsel %vm677_vm13, %v3255_v53, %v686_v54  ;;  %v695_v58 = vsel %vm679_vm15, %v3255_v53, %v694_v56  ;;  %v691_v63 = vsel %vm678_vm14, %v3255_v53, %v690_v57  ;;  %v828_v52 = vld [vmem:[#allocation7 + $0x338] sm:$0xff]  ;;  %v811_v54 = vld [vmem:[#allocation7 + $0x2b0] sm:$0xff]  ;;  %v845_v56 = vld [vmem:[#allocation7 + $0x3c0] sm:$0xff] }
 0x1a2   :  { %v711_v7 = vsel %vm683_vm3, %v3255_v53, %v710_v59  ;;  %v703_v10 = vsel %vm681_vm1, %v3255_v53, %v702_v60  ;;  %v715_v30 = vsel %vm684_vm4, %v3255_v53, %v714_v55  ;;  %v812_v55 = vld [vmem:[#allocation7 + $0x2b8] sm:$0xff]  ;;  %v846_v57 = vld [vmem:[#allocation7 + $0x3c8] sm:$0xff]  ;;  %v2621_v59 = vpack.c.bf16 %v794_v48, %v793_v12 }
 0x1a3   :  { %v688_v11 = vsel %vm676_vm6, %v3273_v61, %v687_v62  ;;  %v696_v6 = vsel %vm678_vm14, %v3273_v61, %v695_v58  ;;  %v692_v14 = vsel %vm677_vm13, %v3273_v61, %v691_v63  ;;  %v712_v31 = vsel %vm682_vm2, %v3273_v61, %v711_v7  ;;  %v795_v58 = vld [vmem:[#allocation7 + $0x230] sm:$0xff]  ;;  %v796_v63 = vld [vmem:[#allocation7 + $0x238] sm:$0xff]  ;;  %v830_v7 = vld [vmem:[#allocation7 + $0x348] sm:$0xff] }
 0x1a4   :  { %v689_v16 = vsel %vm675_vm12, %v3284_v5, %v688_v11  ;;  %v697_v17 = vsel %vm677_vm13, %v3284_v5, %v696_v6  ;;  %v693_v18 = vsel %vm676_vm6, %v3284_v5, %v692_v14  ;;  %v713_v27 = vsel %vm681_vm1, %v3284_v5, %v712_v31  ;;  %v848_v11 = vld [vmem:[#allocation7 + $0x3d8] sm:$0xff] }
 0x1a5   :  { %940 = vmatprep.mubr.f32.mxu1 %v689_v16  ;;  %1010 = vmatprep.mubr.f32.mxu0 %v697_v17  ;;  %v704_v28 = vsel %vm680_vm0, %v3273_v61, %v703_v10  ;;  %v716_v38 = vsel %vm683_vm3, %v3273_v61, %v715_v30  ;;  %v2657_v60 = vpack.c.bf16 %v828_v52, %v827_v50  ;;  %v847_v10 = vld [vmem:[#allocation7 + $0x3d0] sm:$0xff]  ;;  %v706_v12 = vsel %vm683_vm3, %v3243_v49, 0.0  ;;  %v804_v52 = vld [vmem:[#allocation7 + $0x278] sm:$0xff] }
 0x1a6   :  { %v2868_v25 = vpop.eup %2867  ;;  %1011 = vmatmul.mubr.f32.vlgmr.msra.gmra.mrb[6].mxu0 %v693_v18  ;;  %v3326_v43 = vsel %vm682_vm2, %v3284_v5, %v716_v38  ;;  %v2623_v62 = vpack.c.bf16 %v812_v55, %v811_v54  ;;  %v2659_v2 = vpack.c.bf16 %v846_v57, %v845_v56  ;;  %v2625_v6 = vpack.c.bf16 %v796_v63, %v795_v58  ;;  %v831_v16 = vld [vmem:[#allocation7 + $0x350] sm:$0xff]  ;;  %v832_v18 = vld [vmem:[#allocation7 + $0x358] sm:$0xff] }
 0x1a7   :  { %v724_v33 = vmul.f32 %v2868_v25, %v3230_v26  ;;  %2646 = vmatpush3.bf16.msra.mxu0 %v2645_v46  ;;  %1150 = vmatprep.mubr.f32.mxu0 %v713_v27  ;;  %v705_v26 = vsel %vm679_vm15, %v3284_v5, %v704_v28  ;;  %v2653_v46 = vpack.c.bf16 %v826_v40, %v825_v37  ;;  %v799_v27 = vld [vmem:[#allocation7 + $0x250] sm:$0xff]  ;;  %v800_v28 = vld [vmem:[#allocation7 + $0x258] sm:$0xff]  ;;  %v698_v55 = vsel %vm681_vm1, %v3243_v49, 0.0 }
 0x1a8   :  { %2648 = vmatprep.subr.bf16.mxu0 %v2647_v19  ;;  %v2661_v14 = vpack.c.bf16 %v830_v7, %v829_v0  ;;  %v2627_v31 = vpack.c.bf16 %v814_v8, %v813_v1  ;;  %v2663_v17 = vpack.c.bf16 %v848_v11, %v847_v10  ;;  %v815_v19 = vld [vmem:[#allocation7 + $0x2d0] sm:$0xff]  ;;  %v2665_v24 = vpack.c.bf16 %v832_v18, %v831_v16  ;;  %v852_v37 = vld [vmem:[#allocation7 + $0x3f8] sm:$0xff]  ;;  %v858_v1 = vld [vmem:[#allocation7 + $0x428] sm:$0xff] }
 0x1a9   :  { %941 = vmatmul.mubr.f32.vlgmr.msra.gmra.mrb[4].mxu1 %v724_v33  ;;  %v2631_v25 = vpack.c.bf16 %v816_v20, %v815_v19  ;;  %v834_v33 = vld [vmem:[#allocation7 + $0x368] sm:$0xff]  ;;  %v2633_v38 = vpack.c.bf16 %v800_v28, %v799_v27  ;;  %v2671_v44 = vpack.c.bf16 %v852_v37, %v851_v36  ;;  %v707_v54 = vsel %vm682_vm2, %v3255_v53, %v706_v12  ;;  %v855_v0 = vld [vmem:[#allocation7 + $0x410] sm:$0xff]  ;;  %v860_v11 = vld [vmem:[#allocation7 + $0x438] sm:$0xff] }
 0x1aa   :  { %2614 = vmatpush3.bf16.msra.mxu1 %v2613_v22  ;;  %1080 = vmatprep.mubr.f32.mxu1 %v705_v26  ;;  %v850_v22 = vld [vmem:[#allocation7 + $0x3e8] sm:$0xff]  ;;  %v835_v26 = vld [vmem:[#allocation7 + $0x370] sm:$0xff]  ;;  %v708_v57 = vsel %vm681_vm1, %v3273_v61, %v707_v54  ;;  %v865_v16 = vld [vmem:[#allocation7 + $0x460] sm:$0xff] }
 0x1ab   :  { %2650 = vmatpush3.bf16.msra.mxu0 %v2649_v29  ;;  %2616 = vmatprep.subr.bf16.mxu1 %v2615_v34  ;;  %v833_v29 = vld [vmem:[#allocation7 + $0x360] sm:$0xff]  ;;  %v2667_v30 = vpack.c.bf16 %v850_v22, %v849_v21  ;;  %v2673_v48 = vpack.c.bf16 %v836_v45, %v835_v26  ;;  %v709_v58 = vsel %vm680_vm0, %v3284_v5, %v708_v57  ;;  %v859_v10 = vld [vmem:[#allocation7 + $0x430] sm:$0xff]  ;;  %v868_v20 = vld [vmem:[#allocation7 + $0x478] sm:$0xff] }
 0x1ac   :  { %2652 = vmatprep.subr.bf16.mxu0 %v2651_v39  ;;  %v817_v34 = vld [vmem:[#allocation7 + $0x2e0] sm:$0xff]  ;;  %v2669_v39 = vpack.c.bf16 %v834_v33, %v833_v29  ;;  %v867_v19 = vld [vmem:[#allocation7 + $0x470] sm:$0xff]  ;;  %v1332_v27 = vld [vmem:[#allocation8 + $0x108] sm:$0xff] }
 0x1ad   :  { %v2635_v40 = vpack.c.bf16 %v818_v35, %v817_v34  ;;  %v2697_v21 = vpack.c.bf16 %v868_v20, %v867_v19  ;;  %v1347_v22 = vld [vmem:[#allocation8 + $0x180] sm:$0xff]  ;;  %v1316_v29 = vld [vmem:[#allocation8 + $0x88] sm:$0xff]  ;;  %v1349_v36 = vld [vmem:[#allocation8 + $0x190] sm:$0xff] }
 0x1ae   :  { %2618 = vmatpush3.bf16.msra.mxu1 %v2617_v3  ;;  %v819_v3 = vld [vmem:[#allocation7 + $0x2f0] sm:$0xff]  ;;  %v1315_v28 = vld [vmem:[#allocation8 + $0x80] sm:$0xff]  ;;  %v1300_v35 = vld [vmem:[#allocation8 + $0x8] sm:$0xff] }
 0x1af   :  { %2654 = vmatpush3.bf16.msra.mxu0 %v2653_v46  ;;  %2620 = vmatprep.subr.bf16.mxu1 %v2619_v47  ;;  %v820_v46 = vld [vmem:[#allocation7 + $0x2f8] sm:$0xff]  ;;  %v2637_v47 = vpack.c.bf16 %v802_v42, %v801_v41  ;;  %v2699_v33 = vpack.c.bf16 %v1316_v29, %v1315_v28  ;;  %v1299_v34 = vld [vmem:[#allocation8] sm:$0xff]  ;;  %v1317_v42 = vld [vmem:[#allocation8 + $0x90] sm:$0xff] }
 0x1b0   :  { %2656 = vmatprep.subr.bf16.mxu0 %v2655_v51  ;;  %v2639_v50 = vpack.c.bf16 %v820_v46, %v819_v3  ;;  %v803_v51 = vld [vmem:[#allocation7 + $0x270] sm:$0xff]  ;;  %v2701_v37 = vpack.c.bf16 %v1300_v35, %v1299_v34  ;;  %v1318_v26 = vld [vmem:[#allocation8 + $0x98] sm:$0xff]  ;;  %v1351_v46 = vld [vmem:[#allocation8 + $0x1a0] sm:$0xff] }
 0x1b1   :  { %v2641_v56 = vpack.c.bf16 %v804_v52, %v803_v51  ;;  %v1301_v45 = vld [vmem:[#allocation8 + $0x10] sm:$0xff]  ;;  %v1302_v3 = vld [vmem:[#allocation8 + $0x18] sm:$0xff]  ;;  %v1352_v12 = vld [vmem:[#allocation8 + $0x1a8] sm:$0xff] }
 0x1b2   :  { %2622 = vmatpush3.bf16.msra.mxu1 %v2621_v59  ;;  %v699_v59 = vsel %vm680_vm0, %v3255_v53, %v698_v55  ;;  %v2739_v51 = vpack.c.bf16 %v1352_v12, %v1351_v46  ;;  %v1319_v54 = vld [vmem:[#allocation8 + $0xa0] sm:$0xff]  ;;  %v1320_v55 = vld [vmem:[#allocation8 + $0xa8] sm:$0xff]  ;;  %v1357_v19 = vld [vmem:[#allocation8 + $0x1d0] sm:$0xff] }
 0x1b3   :  { %2658 = vmatpush3.bf16.msra.mxu0 %v2657_v60  ;;  %2624 = vmatprep.subr.bf16.mxu1 %v2623_v62  ;;  %v853_v60 = vld [vmem:[#allocation7 + $0x400] sm:$0xff]  ;;  %v854_v62 = vld [vmem:[#allocation7 + $0x408] sm:$0xff]  ;;  %v700_v49 = vsel %vm679_vm15, %v3273_v61, %v699_v59  ;;  %v1326_v28 = vld [vmem:[#allocation8 + $0xd8] sm:$0xff] }
 0x1b4   :  { %2660 = vmatprep.subr.bf16.mxu0 %v2659_v2  ;;  %v2676_v63 = vpack.c.bf16 %v854_v62, %v853_v60  ;;  %v856_v2 = vld [vmem:[#allocation7 + $0x418] sm:$0xff]  ;;  %v701_v53 = vsel %vm678_vm14, %v3284_v5, %v700_v49  ;;  %v857_v61 = vld [vmem:[#allocation7 + $0x420] sm:$0xff]  ;;  %v862_v5 = vld [vmem:[#allocation7 + $0x448] sm:$0xff] }
 0x1b5   :  { %v2679_v7 = vpack.c.bf16 %v856_v2, %v855_v0  ;;  %v2682_v8 = vpack.c.bf16 %v858_v1, %v857_v61  ;;  %v1303_v57 = vld [vmem:[#allocation8 + $0x20] sm:$0xff]  ;;  %v1304_v59 = vld [vmem:[#allocation8 + $0x28] sm:$0xff]  ;;  %v1353_v60 = vld [vmem:[#allocation8 + $0x1b0] sm:$0xff] }
 0x1b6   :  { %2626 = vmatpush3.bf16.msra.mxu1 %v2625_v6  ;;  %v2685_v6 = vpack.c.bf16 %v860_v11, %v859_v10  ;;  %v2709_v62 = vpack.c.bf16 %v1304_v59, %v1303_v57  ;;  %v1337_v49 = vld [vmem:[#allocation8 + $0x130] sm:$0xff]  ;;  %v1355_v10 = vld [vmem:[#allocation8 + $0x1c0] sm:$0xff]  ;;  %v1362_v46 = vld [vmem:[#allocation8 + $0x1f8] sm:$0xff] }
 0x1b7   :  { %2662 = vmatpush3.bf16.msra.mxu0 %v2661_v14  ;;  %2628 = vmatprep.subr.bf16.mxu1 %v2627_v31  ;;  %v2688_v14 = vpack.c.bf16 %v862_v5, %v861_v32  ;;  %v863_v31 = vld [vmem:[#allocation7 + $0x450] sm:$0xff]  ;;  %v1339_v32 = vld [vmem:[#allocation8 + $0x140] sm:$0xff]  ;;  %v1340_v5 = vld [vmem:[#allocation8 + $0x148] sm:$0xff] }
 0x1b8   :  { %2664 = vmatprep.subr.bf16.mxu0 %v2663_v17  ;;  %v2691_v15 = vpack.c.bf16 %v864_v4, %v863_v31  ;;  %v866_v17 = vld [vmem:[#allocation7 + $0x468] sm:$0xff]  ;;  %v1305_v1 = vld [vmem:[#allocation8 + $0x30] sm:$0xff]  ;;  %v2749_v31 = vpack.c.bf16 %v1340_v5, %v1339_v32  ;;  %v1323_v4 = vld [vmem:[#allocation8 + $0xc0] sm:$0xff] }
 0x1b9   :  { %v2694_v18 = vpack.c.bf16 %v866_v17, %v865_v16  ;;  %v1307_v17 = vld [vmem:[#allocation8 + $0x40] sm:$0xff]  ;;  %v1346_v12 = vld [vmem:[#allocation8 + $0x178] sm:$0xff] }
 0x1ba   :  { %2630 = vmatpush3.bf16.msra.mxu1 %v2629_v23  ;;  %v1348_v23 = vld [vmem:[#allocation8 + $0x188] sm:$0xff]  ;;  %v1359_v34 = vld [vmem:[#allocation8 + $0x1e0] sm:$0xff] }
 0x1bb   :  { %2666 = vmatpush3.bf16.msra.mxu0 %v2665_v24  ;;  %2632 = vmatprep.subr.bf16.mxu1 %v2631_v25  ;;  %v1331_v24 = vld [vmem:[#allocation8 + $0x100] sm:$0xff]  ;;  %v2731_v25 = vpack.c.bf16 %v1348_v23, %v1347_v22  ;;  %v1341_v22 = vld [vmem:[#allocation8 + $0x150] sm:$0xff]  ;;  %v1342_v23 = vld [vmem:[#allocation8 + $0x158] sm:$0xff] }
 0x1bc   :  { %2668 = vmatprep.subr.bf16.mxu0 %v2667_v30  ;;  %v2733_v30 = vpack.c.bf16 %v1332_v27, %v1331_v24  ;;  %v1325_v27 = vld [vmem:[#allocation8 + $0xd0] sm:$0xff]  ;;  %v1411_v57 = vld [vmem:[#allocation8 + $0x380] sm:$0xff] }
 0x1bd   :  { %v2719_v29 = vpack.c.bf16 %v1326_v28, %v1325_v27 }
 0x1be   :  { %2634 = vmatpush3.bf16.msra.mxu1 %v2633_v38  ;;  %v1350_v38 = vld [vmem:[#allocation8 + $0x198] sm:$0xff] }
 0x1bf   :  { %2670 = vmatpush3.bf16.msra.mxu0 %v2669_v39  ;;  %2636 = vmatprep.subr.bf16.mxu1 %v2635_v40  ;;  %v2735_v39 = vpack.c.bf16 %v1350_v38, %v1349_v36  ;;  %v1334_v40 = vld [vmem:[#allocation8 + $0x118] sm:$0xff]  ;;  %v1360_v36 = vld [vmem:[#allocation8 + $0x1e8] sm:$0xff] }
 0x1c0   :  { %2672 = vmatprep.subr.bf16.mxu0 %v2671_v44  ;;  %v2703_v44 = vpack.c.bf16 %v1318_v26, %v1317_v42  ;;  %v1344_v38 = vld [vmem:[#allocation8 + $0x168] sm:$0xff]  ;;  %v1311_v26 = vld [vmem:[#allocation8 + $0x60] sm:$0xff] }
 0x1c2   :  { %2638 = vmatpush3.bf16.msra.mxu1 %v2637_v47  ;;  %v2705_v47 = vpack.c.bf16 %v1302_v3, %v1301_v45  ;;  %v1361_v45 = vld [vmem:[#allocation8 + $0x1f0] sm:$0xff] }
 0x1c3   :  { %2674 = vmatpush3.bf16.msra.mxu0 %v2673_v48  ;;  %2640 = vmatprep.subr.bf16.mxu1 %v2639_v50  ;;  %v1335_v48 = vld [vmem:[#allocation8 + $0x120] sm:$0xff]  ;;  %v1336_v50 = vld [vmem:[#allocation8 + $0x128] sm:$0xff] }
 0x1c4   :  { %2700 = vmatprep.subr.bf16.mxu0 %v2699_v33  ;;  %v2741_v52 = vpack.c.bf16 %v1336_v50, %v1335_v48  ;;  %v1310_v33 = vld [vmem:[#allocation8 + $0x58] sm:$0xff]  ;;  %v2759_v48 = vpack.c.bf16 %v1362_v46, %v1361_v45 }
 0x1c6   :  { %2642 = vmatpush3.bf16.msra.mxu1 %v2641_v56  ;;  %1151 = vmatmul.mubr.f32.vlgmr.msra.gmra.mrb[8].mxu0 %v709_v58  ;;  %v2707_v56 = vpack.c.bf16 %v1320_v55, %v1319_v54  ;;  %v1354_v58 = vld [vmem:[#allocation8 + $0x1b8] sm:$0xff]  ;;  %v1313_v55 = vld [vmem:[#allocation8 + $0x70] sm:$0xff] }
 0x1c7   :  { %2675 = vmatprep.subr.bf16.mxu1 %v2997_v9  ;;  %2702 = vmatpush3.bf16.msra.mxu0 %v2701_v37  ;;  %v2743_v0 = vpack.c.bf16 %v1354_v58, %v1353_v60  ;;  %v1343_v37 = vld [vmem:[#allocation8 + $0x160] sm:$0xff]  ;;  %v1412_v60 = vld [vmem:[#allocation8 + $0x388] sm:$0xff] }
 0x1c8   :  { %2704 = vmatprep.subr.bf16.mxu0 %v2703_v44  ;;  %v1312_v44 = vld [vmem:[#allocation8 + $0x68] sm:$0xff]  ;;  %v1379_v58 = vld [vmem:[#allocation8 + $0x280] sm:$0xff] }
 0x1c9   :  { %1081 = vmatmul.mubr.f32.vlgmr.msra.gmra.mrb[6].mxu1 %v701_v53  ;;  %v1321_v53 = vld [vmem:[#allocation8 + $0xb0] sm:$0xff]  ;;  %v2725_v3 = vpack.c.bf16 %v1312_v44, %v1311_v26 }
 0x1ca   :  { %2677 = vmatpush3.bf16.msra.mxu1 %v2676_v63  ;;  %2357 = vmatprep.mubr.msk.f32.mxu1 %vm2998_vm11, %v2999_v13  ;;  %v1338_v63 = vld [vmem:[#allocation8 + $0x138] sm:$0xff] }
 0x1cb   :  { %2678 = vmatprep.subr.bf16.mxu1 %v2997_v9  ;;  %2706 = vmatpush3.bf16.msra.mxu0 %v2705_v47  ;;  %v2745_v2 = vpack.c.bf16 %v1338_v63, %v1337_v49  ;;  %v1345_v47 = vld [vmem:[#allocation8 + $0x170] sm:$0xff]  ;;  %v1380_v49 = vld [vmem:[#allocation8 + $0x288] sm:$0xff] }
 0x1cc   :  { %2708 = vmatprep.subr.bf16.mxu0 %v2707_v56  ;;  %v2761_v50 = vpack.c.bf16 %v1346_v12, %v1345_v47  ;;  %v1314_v56 = vld [vmem:[#allocation8 + $0x78] sm:$0xff]  ;;  %v2763_v63 = vpack.c.bf16 %v1380_v49, %v1379_v58 }
 0x1cd   :  { %v2729_v59 = vpack.c.bf16 %v1314_v56, %v1313_v55 }
 0x1ce   :  { %2680 = vmatpush3.bf16.msra.mxu1 %v2679_v7  ;;  %v1322_v7 = vld [vmem:[#allocation8 + $0xb8] sm:$0xff] }
 0x1cf   :  { %2681 = vmatprep.subr.bf16.mxu1 %v2997_v9  ;;  %2710 = vmatpush3.bf16.msra.mxu0 %v2709_v62  ;;  %v2711_v61 = vpack.c.bf16 %v1322_v7, %v1321_v53  ;;  %v2795_v62 = vpack.c.bf16 %v1412_v60, %v1411_v57  ;;  %v1413_v60 = vld [vmem:[#allocation8 + $0x390] sm:$0xff] }
 0x1d1   :  { %2712 = vmatprep.subr.bf16.mxu0 %v2711_v61  ;;  %v1816_v61 = vld [vmem:[%s3521_s4] ss:$0 sm:$0xff]  ;;  %s3000_s4 = smov [#allocation10]  }
 0x1d2   :  { %2683 = vmatpush3.bf16.msra.mxu1 %v2682_v8  ;;  %v1306_v8 = vld [vmem:[#allocation8 + $0x38] sm:$0xff]  ;;  %s1800_s1 = sshll.u32 %s3000_s4, 4  ;;  %s1801_s1 = int_to_ptr.vmem [resolvable:$true] %s1800_s1 }
 0x1d3   :  { %2684 = vmatprep.subr.bf16.mxu1 %v2997_v9  ;;  %v2713_v11 = vpack.c.bf16 %v1306_v8, %v1305_v1  ;;  %s2961_s22 = scalar_lea.vmem %s1801_s1, 128  ;;  %p2966_p5 = scmp.lt.s32.totalorder %s1801_s1, %s1801_s1 }
 0x1d4   :  { %p2962_p4 = scmp.ne.s32.totalorder %s1801_s1, %s2961_s22  ;;  %p2967_p6 = scmp.lt.s32.totalorder %s2961_s22, %s2961_s22 }
 0x1d5   :  { %2714 = vmatpush3.bf16.msra.mxu0 %v2713_v11 }
 0x1d6   :  { %2686 = vmatpush3.bf16.msra.mxu1 %v2685_v6  ;;  %v1356_v6 = vld [vmem:[#allocation8 + $0x1c8] sm:$0xff]  ;;  %p2968_p7 = por %p2967_p6, %p2966_p5 }
 0x1d7   :  { %2687 = vmatprep.subr.bf16.mxu1 %v2997_v9 }
 0x1d8   :  { %p2969_p8 = pnand %p2968_p7, %p2962_p4 }
 0x1da   :  { %2689 = vmatpush3.bf16.msra.mxu1 %v2688_v14  ;;  %v2747_v14 = vpack.c.bf16 %v1356_v6, %v1355_v10 }
 0x1db   :  { %2690 = vmatprep.subr.bf16.mxu1 %v2997_v9 }
 0x1de   :  { %2692 = vmatpush3.bf16.msra.mxu1 %v2691_v15  ;;  %v1324_v15 = vld [vmem:[#allocation8 + $0xc8] sm:$0xff] }
 0x1df   :  { %2693 = vmatprep.subr.bf16.mxu1 %v2997_v9  ;;  %v2715_v16 = vpack.c.bf16 %v1324_v15, %v1323_v4 }
 0x1e1   :  { %2716 = vmatprep.subr.bf16.mxu0 %v2715_v16 }
 0x1e2   :  { %2695 = vmatpush3.bf16.msra.mxu1 %v2694_v18  ;;  %v1308_v18 = vld [vmem:[#allocation8 + $0x48] sm:$0xff] }
 0x1e3   :  { %2696 = vmatprep.subr.bf16.mxu1 %v2997_v9  ;;  %v2717_v20 = vpack.c.bf16 %v1308_v18, %v1307_v17 }
 0x1e5   :  { %2718 = vmatpush3.bf16.msra.mxu0 %v2717_v20 }
 0x1e6   :  { %2698 = vmatpush3.bf16.msra.mxu1 %v2697_v21  ;;  %v1358_v21 = vld [vmem:[#allocation8 + $0x1d8] sm:$0xff]  ;;  %2720 = vmatprep.subr.bf16.mxu0 %v2719_v29 }
 0x1e7   :  { %2732 = vmatprep.subr.bf16.mxu1 %v2731_v25  ;;  %v2751_v24 = vpack.c.bf16 %v1358_v21, %v1357_v19  ;;  %v2753_v25 = vpack.c.bf16 %v1342_v23, %v1341_v22 }
 0x1e9   :  { %2358 = vmatmul.mubr.f32.vlgmr.msra.gmra.mrb[8].mxu1 %v3326_v43  ;;  %v1333_v43 = vld [vmem:[#allocation8 + $0x110] sm:$0xff] }
 0x1ea   :  { %2734 = vmatpush3.bf16.msra.mxu1 %v2733_v30  ;;  %v2737_v41 = vpack.c.bf16 %v1334_v40, %v1333_v43  ;;  %v1309_v30 = vld [vmem:[#allocation8 + $0x50] sm:$0xff]  ;;  %v2757_v43 = vpack.c.bf16 %v1344_v38, %v1343_v37  ;;  %v1327_v40 = vld [vmem:[#allocation8 + $0xe0] sm:$0xff] }
 0x1eb   :  { %2736 = vmatprep.subr.bf16.mxu1 %v2735_v39  ;;  %v2721_v35 = vpack.c.bf16 %v1310_v33, %v1309_v30  ;;  %v2755_v39 = vpack.c.bf16 %v1360_v36, %v1359_v34  ;;  %v3376_v30 = vld [vmem:[#allocation8 + $0x300] sm:$0xff]  ;;  %v3378_v33 = vld [vmem:[#allocation8 + $0x308] sm:$0xff] }
 0x1ed   :  { %2722 = vmatpush3.bf16.msra.mxu0 %v2721_v35 }
 0x1ee   :  { %2738 = vmatpush3.bf16.msra.mxu1 %v2737_v41  ;;  %v1328_v41 = vld [vmem:[#allocation8 + $0xe8] sm:$0xff] }
 0x1ef   :  { %2740 = vmatprep.subr.bf16.mxu1 %v2739_v51  ;;  %v2723_v42 = vpack.c.bf16 %v1328_v41, %v1327_v40  ;;  %v1329_v51 = vld [vmem:[#allocation8 + $0xf0] sm:$0xff]  ;;  %v2797_v40 = vpack.c.bf16 %v3378_v33, %v3376_v30 }
 0x1f1   :  { %2724 = vmatprep.subr.bf16.mxu0 %v2723_v42 }
 0x1f2   :  { %2742 = vmatpush3.bf16.msra.mxu1 %v2741_v52  ;;  %2726 = vmatpush3.bf16.msra.mxu0 %v2725_v3  ;;  %v1330_v52 = vld [vmem:[#allocation8 + $0xf8] sm:$0xff] }
 0x1f3   :  { %2744 = vmatprep.subr.bf16.mxu1 %v2743_v0  ;;  %v2727_v54 = vpack.c.bf16 %v1330_v52, %v1329_v51 }
 0x1f5   :  { %2728 = vmatprep.subr.bf16.mxu0 %v2727_v54 }
 0x1f6   :  { %2746 = vmatpush3.bf16.msra.mxu1 %v2745_v2  ;;  %2730 = vmatpush3.bf16.msra.mxu0 %v2729_v59 }
 0x1f7   :  { %2748 = vmatprep.subr.bf16.mxu1 %v2747_v14  ;;  %2764 = vmatprep.subr.bf16.mxu0 %v2763_v63  ;;  %v1363_v63 = vld [vmem:[#allocation8 + $0x200] sm:$0xff] }
 0x1fa   :  { %2750 = vmatpush3.bf16.msra.mxu1 %v2749_v31 }
 0x1fb   :  { %2752 = vmatprep.subr.bf16.mxu1 %v2751_v24 }
 0x1fe   :  { %2754 = vmatpush3.bf16.msra.mxu1 %v2753_v25 }
 0x1ff   :  { %2756 = vmatprep.subr.bf16.mxu1 %v2755_v39 }
 0x202   :  { %2758 = vmatpush3.bf16.msra.mxu1 %v2757_v43 }
 0x203   :  { %2760 = vmatprep.subr.bf16.mxu1 %v2759_v48 }
 0x206   :  { %2762 = vmatpush3.bf16.msra.mxu1 %v2761_v50 }
 0x207   :  { %2796 = vmatprep.subr.bf16.mxu1 %v2795_v62  ;;  %v1414_v62 = vld [vmem:[#allocation8 + $0x398] sm:$0xff] }
 0x279   :  { %v2043_v0 = vpop.f32.mrb[6].mxu0 }
 0x27a   :  { %v2044_v2 = vpop.f32.mrb[7].mxu0 }
 0x27b   :  { %v2045_v53 = vadd.f32 %v2044_v2, %v2043_v0  ;;  %v1364_v0 = vld [vmem:[#allocation8 + $0x208] sm:$0xff] }
 0x27c   :  { %v2008_v7 = vpop.f32.mrb[4].mxu1 }
 0x27d   :  { %v2009_v1 = vpop.f32.mrb[5].mxu1 }
 0x27e   :  { %v2010_v8 = vadd.f32 %v2009_v1, %v2008_v7 }
 0x280   :  { %v943_v10 = vadd.f32 %v2010_v8, %v1816_v61  ;;  %v1397_v8 = vld [vmem:[#allocation8 + $0x310] sm:$0xff] }
 0x282   :  { %v1013_v11 = vadd.f32 %v2045_v53, %v943_v10  ;;  %v1398_v10 = vld [vmem:[#allocation8 + $0x318] sm:$0xff] }
 0x299   :  { %v2113_v6 = vpop.f32.mrb[8].mxu0 }
 0x29a   :  { %v2114_v32 = vpop.f32.mrb[9].mxu0 }
 0x29b   :  { %v2115_v5 = vadd.f32 %v2114_v32, %v2113_v6 }
 0x29c   :  { %v2078_v14 = vpop.f32.mrb[6].mxu1 }
 0x29d   :  { %v2079_v31 = vpop.f32.mrb[7].mxu1 }
 0x29e   :  { %v2080_v4 = vadd.f32 %v2079_v31, %v2078_v14  ;;  %v1381_v14 = vld [vmem:[#allocation8 + $0x290] sm:$0xff]  ;;  %v1382_v31 = vld [vmem:[#allocation8 + $0x298] sm:$0xff] }
 0x2a0   :  { %v1083_v15 = vadd.f32 %v2080_v4, %v1013_v11  ;;  %v2765_v4 = vpack.c.bf16 %v1364_v0, %v1363_v63  ;;  %v1387_v63 = vld [vmem:[#allocation8 + $0x2c0] sm:$0xff]  ;;  %v1388_v0 = vld [vmem:[#allocation8 + $0x2c8] sm:$0xff] }
 0x2a2   :  { %v1153_v16 = vadd.f32 %v2115_v5, %v1083_v15  ;;  %v2799_v5 = vpack.c.bf16 %v1414_v62, %v1413_v60  ;;  %v1415_v15 = vld [vmem:[#allocation8 + $0x3a0] sm:$0xff] }
 0x2a3   :  { %v1403_v60 = vld [vmem:[#allocation8 + $0x340] sm:$0xff] }
 0x2bc   :  { %v1222_v17 = vpop.f32.mrb[8].mxu1 }
 0x2bd   :  { %v3369_v18 = vadd.f32 %v1222_v17, %v1153_v16  ;;  %v2359_v19 = vpop.f32.mrb[9].mxu1  ;;  %v1416_v16 = vld [vmem:[#allocation8 + $0x3a8] sm:$0xff] }
 0x2be   :  { %v2803_v33 = vpack.c.bf16 %v1416_v16, %v1415_v15 }
 0x2bf   :  { %v1817_v20 = vadd.f32 2.2, %v3369_v18  ;;  %v1818_v21 = vmul.f32 -1.442695, %v3369_v18 }
 0x2c1   :  { %v1227_v22 = vmul.f32 2.5, %v1817_v20  ;;  %2869 = vpow2.f32 %v1818_v21  ;;  %v2801_v21 = vpack.c.bf16 %v1398_v10, %v1397_v8  ;;  %v1371_v8 = vld [vmem:[#allocation8 + $0x240] sm:$0xff]  ;;  %v1372_v10 = vld [vmem:[#allocation8 + $0x248] sm:$0xff] }
 0x2c2   :  { %v2781_v15 = vpack.c.bf16 %v1372_v10, %v1371_v8  ;;  %v1439_v10 = vld [vmem:[#allocation8 + $0x460] sm:$0xff] }
 0x2c3   :  { %v3373_v23 = vfloor.f32 %v1227_v22 }
 0x2c5   :  { %v1229_v24 = vsub.f32 %v1227_v22, %v3373_v23  ;;  %vm1249_vm7 = vcmp.eq.f32.partialorder %v3373_v23, 0.0  ;;  %vm1251_vm8 = vcmp.eq.f32.partialorder %v3373_v23, 2.0  ;;  %vm1252_vm9 = vcmp.eq.f32.partialorder %v3373_v23, 3.0 }
 0x2c6   :  { %vm1253_vm10 = vcmp.eq.f32.partialorder %v3373_v23, 4.0  ;;  %vm1254_vm12 = vcmp.eq.f32.partialorder %v3373_v23, 5.0  ;;  %vm1255_vm13 = vcmp.eq.f32.partialorder %v3373_v23, 6.0  ;;  %vm1256_vm14 = vcmp.eq.f32.partialorder %v3373_v23, 7.0 }
 0x2c7   :  { %v1230_v25 = vmul.f32 %v1229_v24, %v1229_v24  ;;  %v1232_v27 = vsub.f32 1.0, %v1229_v24  ;;  %v1237_v42 = vmul.f32 3.0, %v1229_v24  ;;  %vm1257_vm15 = vcmp.eq.f32.partialorder %v3373_v23, 8.0 }
 0x2c8   :  { %vm1258_vm0 = vcmp.eq.f32.partialorder %v3373_v23, 9.0  ;;  %vm1259_vm1 = vcmp.eq.f32.partialorder %v3373_v23, 10.0  ;;  %vm1250_vm2 = vcmp.eq.f32.partialorder %v3373_v23, 1.0  ;;  %v1435_v23 = vld [vmem:[#allocation8 + $0x440] sm:$0xff] }
 0x2c9   :  { %v1231_v28 = vmul.f32 %v1230_v25, %v1229_v24  ;;  %v1246_v29 = vmul.f32 %v1232_v27, %v1232_v27  ;;  %v1235_v34 = vmul.f32 3.0, %v1230_v25  ;;  %v1242_v38 = vmul.f32 -6.0, %v1230_v25 }
 0x2ca   :  { %v2767_v25 = vpack.c.bf16 %v1382_v31, %v1381_v14  ;;  %v1390_v14 = vld [vmem:[#allocation8 + $0x2d8] sm:$0xff]  ;;  %v1423_v31 = vld [vmem:[#allocation8 + $0x3e0] sm:$0xff] }
 0x2cb   :  { %v2870_v35 = vpop.eup %2869  ;;  %v1234_v36 = vmul.f32 -3.0, %v1231_v28  ;;  %v1241_v37 = vmul.f32 3.0, %v1231_v28  ;;  %v1247_v39 = vmul.f32 %v1246_v29, %v1232_v27  ;;  %v3423_v58 = vmul.f32 0.16666667, %v1231_v28  ;;  %v1365_v27 = vld [vmem:[#allocation8 + $0x210] sm:$0xff]  ;;  %v1366_v28 = vld [vmem:[#allocation8 + $0x218] sm:$0xff] }
 0x2cc   :  { %v1295_v43 = vadd.f32 1.0, %v2870_v35  ;;  %v1399_v29 = vld [vmem:[#allocation8 + $0x320] sm:$0xff] }
 0x2cd   :  { %v1236_v41 = vadd.f32 %v1235_v34, %v1234_v36  ;;  %v1243_v26 = vadd.f32 %v1242_v38, %v1241_v37  ;;  %v3382_v44 = vmul.f32 0.16666667, %v1247_v39  ;;  %v1400_v34 = vld [vmem:[#allocation8 + $0x328] sm:$0xff]  ;;  %v1383_v35 = vld [vmem:[#allocation8 + $0x2a0] sm:$0xff]  ;;  %v1417_v38 = vld [vmem:[#allocation8 + $0x3b0] sm:$0xff] }
 0x2ce   :  { %2871 = vrcp.f32 %v1295_v43  ;;  %v1384_v36 = vld [vmem:[#allocation8 + $0x2a8] sm:$0xff]  ;;  %v1418_v39 = vld [vmem:[#allocation8 + $0x3b8] sm:$0xff]  ;;  %v2769_v43 = vpack.c.bf16 %v1366_v28, %v1365_v27  ;;  %v1425_v28 = vld [vmem:[#allocation8 + $0x3f0] sm:$0xff] }
 0x2cf   :  { %v1238_v45 = vadd.f32 %v1237_v42, %v1236_v41  ;;  %v1244_v3 = vadd.f32 4.0, %v1243_v26  ;;  %v1260_v12 = vsel %vm1252_vm9, %v3382_v44, 0.0  ;;  %v1288_v48 = vsel %vm1259_vm1, %v3382_v44, 0.0  ;;  %v1367_v42 = vld [vmem:[#allocation8 + $0x220] sm:$0xff]  ;;  %v1368_v26 = vld [vmem:[#allocation8 + $0x228] sm:$0xff] }
 0x2d0   :  { %v1268_v50 = vsel %vm1254_vm12, %v3382_v44, 0.0  ;;  %v1264_v51 = vsel %vm1253_vm10, %v3382_v44, 0.0  ;;  %v1284_v52 = vsel %vm1258_vm0, %v3382_v44, 0.0  ;;  %v1276_v54 = vsel %vm1256_vm14, %v3382_v44, 0.0  ;;  %v1392_v27 = vld [vmem:[#allocation8 + $0x2e8] sm:$0xff] }
 0x2d1   :  { %v1239_v46 = vadd.f32 1.0, %v1238_v45  ;;  %v3394_v47 = vmul.f32 0.16666667, %v1244_v3  ;;  %v2771_v41 = vpack.c.bf16 %v1384_v36, %v1383_v35  ;;  %v1401_v45 = vld [vmem:[#allocation8 + $0x330] sm:$0xff]  ;;  %v2807_v3 = vpack.c.bf16 %v1418_v39, %v1417_v38  ;;  %v1375_v35 = vld [vmem:[#allocation8 + $0x260] sm:$0xff]  ;;  %v1376_v36 = vld [vmem:[#allocation8 + $0x268] sm:$0xff] }
 0x2d2   :  { %v1410_v39 = vld [vmem:[#allocation8 + $0x378] sm:$0xff] }
 0x2d3   :  { %v3412_v55 = vmul.f32 0.16666667, %v1239_v46  ;;  %v1261_v56 = vsel %vm1251_vm8, %v3394_v47, %v1260_v12  ;;  %v1269_v57 = vsel %vm1253_vm10, %v3394_v47, %v1268_v50  ;;  %v1265_v59 = vsel %vm1252_vm9, %v3394_v47, %v1264_v51  ;;  %v1402_v46 = vld [vmem:[#allocation8 + $0x338] sm:$0xff]  ;;  %v1385_v12 = vld [vmem:[#allocation8 + $0x2b0] sm:$0xff]  ;;  %v1419_v50 = vld [vmem:[#allocation8 + $0x3c0] sm:$0xff] }
 0x2d4   :  { %v1285_v49 = vsel %vm1257_vm15, %v3394_v47, %v1284_v52  ;;  %v1277_v2 = vsel %vm1255_vm13, %v3394_v47, %v1276_v54  ;;  %v1289_v22 = vsel %vm1258_vm0, %v3394_v47, %v1288_v48  ;;  %v1386_v48 = vld [vmem:[#allocation8 + $0x2b8] sm:$0xff]  ;;  %v1420_v51 = vld [vmem:[#allocation8 + $0x3c8] sm:$0xff]  ;;  %v2773_v52 = vpack.c.bf16 %v1368_v26, %v1367_v42 }
 0x2d5   :  { %v1262_v53 = vsel %vm1250_vm2, %v3412_v55, %v1261_v56  ;;  %v1270_v7 = vsel %vm1252_vm9, %v3412_v55, %v1269_v57  ;;  %v1266_v61 = vsel %vm1251_vm8, %v3412_v55, %v1265_v59  ;;  %v1286_v1 = vsel %vm1256_vm14, %v3412_v55, %v1285_v49  ;;  %v1369_v57 = vld [vmem:[#allocation8 + $0x230] sm:$0xff]  ;;  %v1370_v59 = vld [vmem:[#allocation8 + $0x238] sm:$0xff]  ;;  %v1404_v49 = vld [vmem:[#allocation8 + $0x348] sm:$0xff] }
 0x2d6   :  { %v1263_v11 = vsel %vm1249_vm7, %v3423_v58, %v1262_v53  ;;  %v1271_v6 = vsel %vm1251_vm8, %v3423_v58, %v1270_v7  ;;  %v1267_v32 = vsel %vm1250_vm2, %v3423_v58, %v1266_v61  ;;  %v1287_v19 = vsel %vm1255_vm13, %v3423_v58, %v1286_v1  ;;  %v1422_v53 = vld [vmem:[#allocation8 + $0x3d8] sm:$0xff] }
 0x2d7   :  { %1507 = vmatprep.mubr.f32.mxu0 %v1263_v11  ;;  %1577 = vmatprep.mubr.f32.mxu1 %v1271_v6  ;;  %v1278_v20 = vsel %vm1254_vm12, %v3412_v55, %v1277_v2  ;;  %v1290_v30 = vsel %vm1257_vm15, %v3412_v55, %v1289_v22  ;;  %v2809_v54 = vpack.c.bf16 %v1402_v46, %v1401_v45  ;;  %v1421_v2 = vld [vmem:[#allocation8 + $0x3d0] sm:$0xff]  ;;  %v1280_v42 = vsel %vm1257_vm15, %v3382_v44, 0.0  ;;  %v1378_v46 = vld [vmem:[#allocation8 + $0x278] sm:$0xff] }
 0x2d8   :  { %v2872_v17 = vpop.eup %2871  ;;  %1578 = vmatmul.mubr.f32.vlgmr.msra.gmra.mrb[10].mxu1 %v1267_v32  ;;  %v3465_v37 = vsel %vm1256_vm14, %v3423_v58, %v1290_v30  ;;  %v2775_v56 = vpack.c.bf16 %v1386_v48, %v1385_v12  ;;  %v2811_v62 = vpack.c.bf16 %v1420_v51, %v1419_v50  ;;  %v2777_v7 = vpack.c.bf16 %v1370_v59, %v1369_v57  ;;  %v1405_v11 = vld [vmem:[#allocation8 + $0x350] sm:$0xff]  ;;  %v1406_v32 = vld [vmem:[#allocation8 + $0x358] sm:$0xff] }
 0x2d9   :  { %v1298_v24 = vmul.f32 %v2872_v17, %v3369_v18  ;;  %2798 = vmatpush3.bf16.msra.mxu1 %v2797_v40  ;;  %1717 = vmatprep.mubr.f32.mxu1 %v1287_v19  ;;  %v1279_v18 = vsel %vm1253_vm10, %v3423_v58, %v1278_v20  ;;  %v2805_v40 = vpack.c.bf16 %v1400_v34, %v1399_v29  ;;  %v1373_v19 = vld [vmem:[#allocation8 + $0x250] sm:$0xff]  ;;  %v1374_v20 = vld [vmem:[#allocation8 + $0x258] sm:$0xff]  ;;  %v1272_v48 = vsel %vm1255_vm13, %v3382_v44, 0.0 }
 0x2da   :  { %2800 = vmatprep.subr.bf16.mxu1 %v2799_v5  ;;  %v2813_v61 = vpack.c.bf16 %v1404_v49, %v1403_v60  ;;  %v2779_v1 = vpack.c.bf16 %v1388_v0, %v1387_v63  ;;  %v2815_v6 = vpack.c.bf16 %v1422_v53, %v1421_v2  ;;  %v1389_v5 = vld [vmem:[#allocation8 + $0x2d0] sm:$0xff]  ;;  %v2817_v16 = vpack.c.bf16 %v1406_v32, %v1405_v11  ;;  %v1426_v29 = vld [vmem:[#allocation8 + $0x3f8] sm:$0xff]  ;;  %v1432_v63 = vld [vmem:[#allocation8 + $0x428] sm:$0xff] }
 0x2db   :  { %1508 = vmatmul.mubr.f32.vlgmr.msra.gmra.mrb[10].mxu0 %v1298_v24  ;;  %v2783_v17 = vpack.c.bf16 %v1390_v14, %v1389_v5  ;;  %v1408_v24 = vld [vmem:[#allocation8 + $0x368] sm:$0xff]  ;;  %v2785_v30 = vpack.c.bf16 %v1374_v20, %v1373_v19  ;;  %v2823_v38 = vpack.c.bf16 %v1426_v29, %v1425_v28  ;;  %v1281_v12 = vsel %vm1256_vm14, %v3394_v47, %v1280_v42  ;;  %v1429_v60 = vld [vmem:[#allocation8 + $0x410] sm:$0xff]  ;;  %v1434_v53 = vld [vmem:[#allocation8 + $0x438] sm:$0xff] }
 0x2dc   :  { %2766 = vmatpush3.bf16.msra.mxu0 %v2765_v4  ;;  %1647 = vmatprep.mubr.f32.mxu0 %v1279_v18  ;;  %v1424_v4 = vld [vmem:[#allocation8 + $0x3e8] sm:$0xff]  ;;  %v1409_v18 = vld [vmem:[#allocation8 + $0x370] sm:$0xff]  ;;  %v1282_v51 = vsel %vm1255_vm13, %v3412_v55, %v1281_v12  ;;  %v1442_v5 = vld [vmem:[#allocation8 + $0x478] sm:$0xff] }
 0x2dd   :  { %2802 = vmatpush3.bf16.msra.mxu1 %v2801_v21  ;;  %2768 = vmatprep.subr.bf16.mxu0 %v2767_v25  ;;  %v1407_v21 = vld [vmem:[#allocation8 + $0x360] sm:$0xff]  ;;  %v2819_v22 = vpack.c.bf16 %v1424_v4, %v1423_v31  ;;  %v2825_v26 = vpack.c.bf16 %v1410_v39, %v1409_v18  ;;  %v1283_v57 = vsel %vm1254_vm12, %v3423_v58, %v1282_v51  ;;  %v1433_v2 = vld [vmem:[#allocation8 + $0x430] sm:$0xff]  ;;  %v1440_v11 = vld [vmem:[#allocation8 + $0x468] sm:$0xff] }
 0x2de   :  { %2804 = vmatprep.subr.bf16.mxu1 %v2803_v33  ;;  %v1391_v25 = vld [vmem:[#allocation8 + $0x2e0] sm:$0xff]  ;;  %v2821_v33 = vpack.c.bf16 %v1408_v24, %v1407_v21  ;;  %v1441_v32 = vld [vmem:[#allocation8 + $0x470] sm:$0xff] }
 0x2df   :  { %v2787_v34 = vpack.c.bf16 %v1392_v27, %v1391_v25  ;;  %v2849_v14 = vpack.c.bf16 %v1442_v5, %v1441_v32 }
 0x2e0   :  { %2770 = vmatpush3.bf16.msra.mxu0 %v2769_v43  ;;  %v1393_v43 = vld [vmem:[#allocation8 + $0x2f0] sm:$0xff] }
 0x2e1   :  { %2806 = vmatpush3.bf16.msra.mxu1 %v2805_v40  ;;  %2772 = vmatprep.subr.bf16.mxu0 %v2771_v41  ;;  %v1394_v40 = vld [vmem:[#allocation8 + $0x2f8] sm:$0xff]  ;;  %v2789_v41 = vpack.c.bf16 %v1376_v36, %v1375_v35 }
 0x2e2   :  { %2808 = vmatprep.subr.bf16.mxu1 %v2807_v3  ;;  %v2791_v45 = vpack.c.bf16 %v1394_v40, %v1393_v43  ;;  %v1377_v3 = vld [vmem:[#allocation8 + $0x270] sm:$0xff] }
 0x2e3   :  { %v2793_v50 = vpack.c.bf16 %v1378_v46, %v1377_v3 }
 0x2e4   :  { %2774 = vmatpush3.bf16.msra.mxu0 %v2773_v52  ;;  %v1273_v52 = vsel %vm1254_vm12, %v3394_v47, %v1272_v48 }
 0x2e5   :  { %2810 = vmatpush3.bf16.msra.mxu1 %v2809_v54  ;;  %2776 = vmatprep.subr.bf16.mxu0 %v2775_v56  ;;  %v1427_v54 = vld [vmem:[#allocation8 + $0x400] sm:$0xff]  ;;  %v1428_v56 = vld [vmem:[#allocation8 + $0x408] sm:$0xff]  ;;  %v1274_v44 = vsel %vm1253_vm10, %v3412_v55, %v1273_v52 }
 0x2e6   :  { %2812 = vmatprep.subr.bf16.mxu1 %v2811_v62  ;;  %v2828_v59 = vpack.c.bf16 %v1428_v56, %v1427_v54  ;;  %v1430_v62 = vld [vmem:[#allocation8 + $0x418] sm:$0xff]  ;;  %v1275_v47 = vsel %vm1252_vm9, %v3423_v58, %v1274_v44  ;;  %v1431_v55 = vld [vmem:[#allocation8 + $0x420] sm:$0xff]  ;;  %v1436_v58 = vld [vmem:[#allocation8 + $0x448] sm:$0xff] }
 0x2e7   :  { %v2831_v49 = vpack.c.bf16 %v1430_v62, %v1429_v60  ;;  %v2834_v0 = vpack.c.bf16 %v1432_v63, %v1431_v55 }
 0x2e8   :  { %2778 = vmatpush3.bf16.msra.mxu0 %v2777_v7  ;;  %v2837_v7 = vpack.c.bf16 %v1434_v53, %v1433_v2 }
 0x2e9   :  { %2814 = vmatpush3.bf16.msra.mxu1 %v2813_v61  ;;  %2780 = vmatprep.subr.bf16.mxu0 %v2779_v1  ;;  %v2840_v61 = vpack.c.bf16 %v1436_v58, %v1435_v23  ;;  %v1438_v1 = vld [vmem:[#allocation8 + $0x458] sm:$0xff] }
 0x2ea   :  { %2816 = vmatprep.subr.bf16.mxu1 %v2815_v6  ;;  %v2846_v6 = vpack.c.bf16 %v1440_v11, %v1439_v10 }
 0x2ec   :  { %2782 = vmatpush3.bf16.msra.mxu0 %v2781_v15 }
 0x2ed   :  { %2818 = vmatpush3.bf16.msra.mxu1 %v2817_v16  ;;  %2784 = vmatprep.subr.bf16.mxu0 %v2783_v17 }
 0x2ee   :  { %2820 = vmatprep.subr.bf16.mxu1 %v2819_v22 }
 0x2f0   :  { %2786 = vmatpush3.bf16.msra.mxu0 %v2785_v30 }
 0x2f1   :  { %2822 = vmatpush3.bf16.msra.mxu1 %v2821_v33  ;;  %2788 = vmatprep.subr.bf16.mxu0 %v2787_v34 }
 0x2f2   :  { %2824 = vmatprep.subr.bf16.mxu1 %v2823_v38 }
 0x2f4   :  { %2790 = vmatpush3.bf16.msra.mxu0 %v2789_v41 }
 0x2f5   :  { %2826 = vmatpush3.bf16.msra.mxu1 %v2825_v26  ;;  %2792 = vmatprep.subr.bf16.mxu0 %v2791_v45 }
 0x2f8   :  { %2794 = vmatpush3.bf16.msra.mxu0 %v2793_v50  ;;  %1718 = vmatmul.mubr.f32.vlgmr.msra.gmra.mrb[12].mxu1 %v1283_v57 }
 0x2f9   :  { %2827 = vmatprep.subr.bf16.mxu0 %v2997_v9 }
 0x2fb   :  { %1648 = vmatmul.mubr.f32.vlgmr.msra.gmra.mrb[12].mxu0 %v1275_v47 }
 0x2fc   :  { %2829 = vmatpush3.bf16.msra.mxu0 %v2828_v59  ;;  %2392 = vmatprep.mubr.msk.f32.mxu0 %vm2998_vm11, %v2999_v13  ;;  %v1437_v13 = vld [vmem:[#allocation8 + $0x450] sm:$0xff] }
 0x2fd   :  { %2830 = vmatprep.subr.bf16.mxu0 %v2997_v9  ;;  %v2843_v8 = vpack.c.bf16 %v1438_v1, %v1437_v13 }
 0x300   :  { %2832 = vmatpush3.bf16.msra.mxu0 %v2831_v49 }
 0x301   :  { %2833 = vmatprep.subr.bf16.mxu0 %v2997_v9 }
 0x304   :  { %2835 = vmatpush3.bf16.msra.mxu0 %v2834_v0 }
 0x305   :  { %2836 = vmatprep.subr.bf16.mxu0 %v2997_v9 }
 0x308   :  { %2838 = vmatpush3.bf16.msra.mxu0 %v2837_v7 }
 0x309   :  { %2839 = vmatprep.subr.bf16.mxu0 %v2997_v9 }
 0x30c   :  { %2841 = vmatpush3.bf16.msra.mxu0 %v2840_v61 }
 0x30d   :  { %2842 = vmatprep.subr.bf16.mxu0 %v2997_v9 }
 0x310   :  { %2844 = vmatpush3.bf16.msra.mxu0 %v2843_v8 }
 0x311   :  { %2845 = vmatprep.subr.bf16.mxu0 %v2997_v9 }
 0x314   :  { %2847 = vmatpush3.bf16.msra.mxu0 %v2846_v6 }
 0x315   :  { %2848 = vmatprep.subr.bf16.mxu0 %v2997_v9 }
 0x318   :  { %2850 = vmatpush3.bf16.msra.mxu0 %v2849_v14 }
 0x31b   :  { %2393 = vmatmul.mubr.f32.vlgmr.msra.gmra.mrb[14].mxu0 %v3465_v37 }
 0x3ab   :  { %v2200_v31 = vpop.f32.mrb[10].mxu1 }
 0x3ac   :  { %v2201_v4 = vpop.f32.mrb[11].mxu1 }
 0x3ad   :  { %v2202_v15 = vadd.f32 %v2201_v4, %v2200_v31 }
 0x3ae   :  { %v2165_v16 = vpop.f32.mrb[10].mxu0 }
 0x3af   :  { %v2166_v17 = vpop.f32.mrb[11].mxu0 }
 0x3b0   :  { %v2167_v19 = vadd.f32 %v2166_v17, %v2165_v16 }
 0x3b2   :  { %v1580_v20 = vadd.f32 %v2202_v15, %v2167_v19 }
 0x3cb   :  { %v2270_v21 = vpop.f32.mrb[12].mxu1 }
 0x3cc   :  { %v2271_v22 = vpop.f32.mrb[13].mxu1 }
 0x3cd   :  { %v2272_v24 = vadd.f32 %v2271_v22, %v2270_v21 }
 0x3ce   :  { %v2235_v25 = vpop.f32.mrb[12].mxu0 }
 0x3cf   :  { %v2236_v27 = vpop.f32.mrb[13].mxu0 }
 0x3d0   :  { %v2237_v28 = vadd.f32 %v2236_v27, %v2235_v25 }
 0x3d2   :  { %v1650_v29 = vadd.f32 %v2237_v28, %v1580_v20 }
 0x3d4   :  { %v1720_v30 = vadd.f32 %v2272_v24, %v1650_v29 }
 0x3ee   :  { %v1789_v9 = vpop.f32.mrb[14].mxu0 }
 0x3ef   :  { %v1790_v33 = vadd.f32 %v1789_v9, %v1720_v30  ;;  %v2394_v37 = vpop.f32.mrb[15].mxu0 }
 0x3f1   :  { %1793 = vst [vmem:[#allocation10] sm:$0xff] %v1790_v33 }
 0x3f2   :  { %2972 = shalt.err (!%p2969_p8)
}
 0x3f3   :  { %s2973_s25 = scalar_lea.hbm %s3523_s6, 128 }
 0x3f4   :  { %p2974_p9 = scmp.ne.s32.totalorder %s3523_s6, %s2973_s25  ;;  %p2977_p10 = scmp.lt.u32.totalorder %s2973_s25, %s3523_s6 }
 0x3f6   :  { %p2979_p11 = pnand %p2977_p10, %p2974_p9 }
 0x3f8   :  { %2982 = shalt.err (!%p2979_p11)
}
 0x3f9   :  { %1803 = dma.vmem_to_hbm [thread:$0]  %s1801_s1, 128, %s3523_s6, [#allocation4]  }
 0x3fa   :  { %2989 = dma.done.wait [#allocation4], 128  }
 0x3fb   :  { %2990 = vsyncadd [#allocation4], 4294967168 }
 0x3fc   :  { %1807 = vsyncpa [#allocation3], 1 }
 0x3fd   :  { %1808 = vsyncpa [#allocation6], 1 }
 0x3fe   :  { %1809 = vsyncpa [#allocation9], 1 }
 0x3ff   :  { %1810 = vsyncpa [#allocation4], 1 }

</bundles_post_ra>
